<compile_context>
chip_gen: v5e
topology: v5e:2x2
jax: 0.10.0
libtpu: 0.0.40
codegen_flags: <defaults>
</compile_context>

<pallas_src>
import functools

import jax
import jax.numpy as jnp
from jax import lax
from jax.experimental import pallas as pl
from jax.experimental.pallas import tpu as pltpu


def _vmem_spec():
    # full-array block resident in VMEM (no tiling -- shapes are small)
    return pl.BlockSpec(memory_space=pltpu.MemorySpace.VMEM)


# ----------------------------- fused kernel --------------------------------
def captioner_kernel(captions_ref, patches_ref, pool_ref, wconv_ref, bconv_ref,
                     wproj_ref, bproj_ref, embed_ref, wih_ref, whh_ref,
                     blstm_ref, wout_ref, bout_ref, out_ref, *,
                     batch_pad, seq_len):
    """Encoder + embedding gather + LSTM decoder, fully fused.

    captions: (S*Bp, 1) int32   time-major flattened caption token ids
    patches:  (B*HW, Kpad)      im2col patches (K zero-padded to mult of 8)
    pool:     (Bp, B*HW)        block-diagonal 1/HW pooling matrix
    wconv:    (Kpad, C), bconv (1, C)
    wproj:    (C, E),    bproj (1, E)
    embed:    (V, E)            embedding table
    wih:      (E, 4H), whh (H, 4H), blstm (1, 4H)
    wout:     (H, Vpad), bout (1, Vpad)   (V zero-padded to lane width)
    out:      (T*Bp, Vpad)      logits, time-major flattened, lane-dense
    """
    Bp = batch_pad
    S = seq_len
    T = S + 1
    Hd = whh_ref.shape[0]
    V = embed_ref.shape[0]

    # ---- encoder: conv-as-matmul + ReLU + matmul global-avg-pool + proj ----
    conv = (jnp.dot(patches_ref[...], wconv_ref[...],
                    preferred_element_type=jnp.float32)
            + bconv_ref[...])                                   # (B*HW, C)
    conv = jnp.maximum(conv, 0.0)                               # ReLU
    pooled = jnp.dot(pool_ref[...], conv,
                     preferred_element_type=jnp.float32)        # (Bp, C)
    feat = (jnp.dot(pooled, wproj_ref[...],
                    preferred_element_type=jnp.float32)
            + bproj_ref[...])                                   # (Bp, E)

    # ---- embedding gather via one-hot matmul (already time-major) ----
    toks = captions_ref[...]                                    # (S*Bp, 1) i32
    vocab_iota = lax.broadcasted_iota(jnp.int32, (S * Bp, V), 1)
    one_hot = (vocab_iota == toks).astype(jnp.float32)          # (S*Bp, V)
    emb = jnp.dot(one_hot, embed_ref[...],
                  preferred_element_type=jnp.float32)           # (S*Bp, E)

    # ---- LSTM inputs in registers (time-major) + hoisted x @ W_ih ----
    x = jnp.concatenate([feat, emb], axis=0)                    # (T*Bp, E)
    gates_x = (jnp.dot(x, wih_ref[...],
                       preferred_element_type=jnp.float32)
               + blstm_ref[...])                                # (T*Bp, 4H)

    # ---- statically unrolled recurrence: only h @ W_hh + elementwise ----
    whh = whh_ref[...]                                          # hoisted load
    h = jnp.zeros((Bp, Hd), jnp.float32)
    c = jnp.zeros((Bp, Hd), jnp.float32)
    hs = []
    for t in range(T):
        g = gates_x[t * Bp:(t + 1) * Bp, :] + jnp.dot(
            h, whh, preferred_element_type=jnp.float32)         # (Bp, 4H)
        sg = jax.nn.sigmoid(g)      # one EUP push over the whole gate block
        tg = jnp.tanh(g)            # one EUP push over the whole gate block
        i_g = sg[:, 0 * Hd:1 * Hd]
        f_g = sg[:, 1 * Hd:2 * Hd]
        g_g = tg[:, 2 * Hd:3 * Hd]
        o_g = sg[:, 3 * Hd:4 * Hd]
        c = f_g * c + i_g * g_g
        h = o_g * jnp.tanh(c)       # third EUP push
        hs.append(h)

    # ---- hoisted vocab projection: one (T*Bp, H) x (H, Vpad) matmul ----
    hs_all = jnp.concatenate(hs, axis=0)                        # (T*Bp, H)
    out_ref[...] = (jnp.dot(hs_all, wout_ref[...],
                            preferred_element_type=jnp.float32)
                    + bout_ref[...])                            # (T*Bp, Vpad)


# ------------------------------- wrapper ------------------------------------
def init_params(key, *, cin=3, cconv=16, embed=32, hidden=32, vocab=64):
    ks = jax.random.split(key, 9)
    s = 0.1
    return {
        'conv_w': s * jax.random.normal(ks[0], (cconv, cin, 3, 3), jnp.float32),
        'conv_b': s * jax.random.normal(ks[1], (cconv,), jnp.float32),
        'proj_w': s * jax.random.normal(ks[2], (cconv, embed), jnp.float32),
        'proj_b': s * jax.random.normal(ks[3], (embed,), jnp.float32),
        'embed': s * jax.random.normal(ks[4], (vocab, embed), jnp.float32),
        'w_ih': s * jax.random.normal(ks[5], (embed, 4 * hidden), jnp.float32),
        'w_hh': s * jax.random.normal(ks[6], (hidden, 4 * hidden), jnp.float32),
        'b_lstm': s * jax.random.normal(ks[7], (4 * hidden,), jnp.float32),
        'w_out': s * jax.random.normal(ks[8], (hidden, vocab), jnp.float32),
        'b_out': jnp.zeros((vocab,), jnp.float32),
    }


def _im2col_3x3(x_nhwc):
    """Extract 3x3 pad=1 patches: (B, H, W, C) -> (B, H*W, 9*C)."""
    B, H, W, C = x_nhwc.shape
    xp = jnp.pad(x_nhwc, ((0, 0), (1, 1), (1, 1), (0, 0)))
    patches = jnp.stack(
        [xp[:, dy:dy + H, dx:dx + W, :] for dy in range(3) for dx in range(3)],
        axis=3)                                                  # (B,H,W,9,C)
    return patches.reshape(B, H * W, 9 * C)


def _round_up(x, m):
    return -(-x // m) * m


@jax.jit
def image_captioner_forward(images_nchw, captions, params):
    """images: (B, 3, H, W) float32, captions: (B, S) int32
       returns logits (B, S + 1, vocab_size)."""
    B, Cin, H, W = images_nchw.shape
    S = captions.shape[1]
    T = S + 1
    Cout = params['conv_w'].shape[0]
    E = params['proj_w'].shape[1]
    Hd = params['w_hh'].shape[0]
    V = params['w_out'].shape[1]
    HW = H * W
    K = 9 * Cin
    Kpad = _round_up(K, 8)          # sublane-friendly contraction dim
    Vpad = _round_up(V, 128)        # lane-dense output stores
    Bpad = _round_up(max(B, 8), 8)  # full-sublane batch rows

    # ---- glue: layout + im2col (data rearrangement only, tiny arrays) ----
    x_nhwc = jnp.transpose(images_nchw, (0, 2, 3, 1)).astype(jnp.float32)
    patches = _im2col_3x3(x_nhwc).reshape(B * HW, K)             # (B*HW, 27)
    patches = jnp.pad(patches, ((0, 0), (0, Kpad - K)))          # (B*HW, 32)
    # torch conv weight (Cout, Cin, kh, kw) -> matmul weight (kh*kw*Cin, Cout)
    wconv_mat = jnp.transpose(params['conv_w'], (2, 3, 1, 0)).reshape(K, Cout)
    wconv_mat = jnp.pad(wconv_mat, ((0, Kpad - K), (0, 0)))      # (32, Cout)
    # block-diagonal 1/HW pooling matrix (rows >= B are zero -> pad rows = 0)
    pool_mat = jnp.repeat(jnp.eye(Bpad, B, dtype=jnp.float32),
                          HW, axis=1) / HW                       # (Bpad, B*HW)
    # vocab-padded output projection (lane-dense)
    wout_pad = jnp.pad(params['w_out'], ((0, 0), (0, Vpad - V)))
    bout_pad = jnp.pad(params['b_out'], (0, Vpad - V)).reshape(1, Vpad)
    # captions -> time-major, batch rows padded to Bpad (row s*Bpad + b);
    # clamp ids so OOV behaves like jnp.take's clamping.
    cap = jnp.clip(captions.astype(jnp.int32), 0, V - 1)
    cap_pad = jnp.zeros((Bpad, S), jnp.int32).at[:B, :].set(cap)
    captions_tm = jnp.transpose(cap_pad, (1, 0)).reshape(S * Bpad, 1)

    # ---- single fused Pallas kernel ----
    out = pl.pallas_call(
        functools.partial(captioner_kernel, batch_pad=Bpad, seq_len=S),
        out_shape=jax.ShapeDtypeStruct((T * Bpad, Vpad), jnp.float32),
        in_specs=[_vmem_spec()] * 13,
        out_specs=_vmem_spec(),
    )(captions_tm, patches, pool_mat, wconv_mat,
      params['conv_b'].reshape(1, Cout),
      params['proj_w'], params['proj_b'].reshape(1, E),
      params['embed'], params['w_ih'], params['w_hh'],
      params['b_lstm'].reshape(1, 4 * Hd),
      wout_pad, bout_pad)

    logits = out.reshape(T, Bpad, Vpad)[:, :B, :V]               # (T, B, V)
    return jnp.transpose(logits, (1, 0, 2))                      # (B, T, V)


# --------------------------- pure-JAX reference ------------------------------
def reference_forward(images_nchw, captions, params):
    B, Cin, H, W = images_nchw.shape
    Cout = params['conv_w'].shape[0]
    Hd = params['w_hh'].shape[0]
    x_nhwc = jnp.transpose(images_nchw, (0, 2, 3, 1)).astype(jnp.float32)
    patches = _im2col_3x3(x_nhwc)
    wconv_mat = jnp.transpose(params['conv_w'], (2, 3, 1, 0)).reshape(
        9 * Cin, Cout)
    conv = jnp.maximum(patches @ wconv_mat + params['conv_b'], 0.0)
    feat = jnp.mean(conv, axis=1) @ params['proj_w'] + params['proj_b']
    emb = jnp.take(params['embed'], captions, axis=0)
    inputs = jnp.concatenate([feat[:, None, :], emb], axis=1)

    def step(carry, x_t):
        h, c = carry
        gates = x_t @ params['w_ih'] + h @ params['w_hh'] + params['b_lstm']
        i_g = jax.nn.sigmoid(gates[:, 0 * Hd:1 * Hd])
        f_g = jax.nn.sigmoid(gates[:, 1 * Hd:2 * Hd])
        g_g = jnp.tanh(gates[:, 2 * Hd:3 * Hd])
        o_g = jax.nn.sigmoid(gates[:, 3 * Hd:4 * Hd])
        c_new = f_g * c + i_g * g_g
        h_new = o_g * jnp.tanh(c_new)
        return (h_new, c_new), h_new @ params['w_out'] + params['b_out']

    h0 = jnp.zeros((B, Hd), jnp.float32)
    _, logits_t = jax.lax.scan(step, (h0, h0),
                               jnp.transpose(inputs, (1, 0, 2)))
    return jnp.transpose(logits_t, (1, 0, 2))


if __name__ == "__main__":
    key = jax.random.PRNGKey(0)
    k_img, k_cap, k_par = jax.random.split(key, 3)

    B, Cin, Hh, Ww, S, VOCAB = 2, 3, 16, 16, 8, 64
    images = jax.random.normal(k_img, (B, Cin, Hh, Ww), jnp.float32)
    captions = jax.random.randint(k_cap, (B, S), 0, VOCAB, jnp.int32)
    params = init_params(k_par, cin=Cin, cconv=16, embed=32, hidden=32,
                         vocab=VOCAB)

    out = image_captioner_forward(images, captions, params)
    out = jax.block_until_ready(out)

    ref = reference_forward(images, captions, params)
    assert out.shape == (B, S + 1, VOCAB), out.shape
    assert bool(jnp.all(jnp.isfinite(out)))
    assert bool(jnp.allclose(out, ref, atol=2e-2, rtol=2e-2))
    print("KERNEL_OK")
</pallas_src>

<mosaic_0001>
module attributes {stable_mosaic.version = 11 : i64} {
  func.func @captioner_kernel(%arg0: memref<64x1xi32, #tpu.memory_space<vmem>>, %arg1: memref<512x32xf32, #tpu.memory_space<vmem>>, %arg2: memref<8x512xf32, #tpu.memory_space<vmem>>, %arg3: memref<32x16xf32, #tpu.memory_space<vmem>>, %arg4: memref<1x16xf32, #tpu.memory_space<vmem>>, %arg5: memref<16x32xf32, #tpu.memory_space<vmem>>, %arg6: memref<1x32xf32, #tpu.memory_space<vmem>>, %arg7: memref<64x32xf32, #tpu.memory_space<vmem>>, %arg8: memref<32x128xf32, #tpu.memory_space<vmem>>, %arg9: memref<32x128xf32, #tpu.memory_space<vmem>>, %arg10: memref<1x128xf32, #tpu.memory_space<vmem>>, %arg11: memref<32x128xf32, #tpu.memory_space<vmem>>, %arg12: memref<1x128xf32, #tpu.memory_space<vmem>>, %arg13: memref<72x128xf32, #tpu.memory_space<vmem>>) attributes {dimension_semantics = [], scalar_prefetch = 0 : i64, scratch_operands = 0 : i64, tpu.core_type = #tpu.core_type<tc>} {
    %c0 = arith.constant 0 : index
    %c0_0 = arith.constant 0 : index
    %0 = vector.load %arg1[%c0, %c0_0] : memref<512x32xf32, #tpu.memory_space<vmem>>, vector<512x32xf32>
    %c0_1 = arith.constant 0 : index
    %c0_2 = arith.constant 0 : index
    %1 = vector.load %arg3[%c0_1, %c0_2] : memref<32x16xf32, #tpu.memory_space<vmem>>, vector<32x16xf32>
    %cst = arith.constant dense<0.000000e+00> : vector<512x16xf32>
    %2 = tpu.matmul %0, %1, %cst {dimension_numbers = #tpu.dot_dimension_numbers<[1], [0], [0], [1], [0, 0, 1, 1], [], []>} : vector<512x32xf32>, vector<32x16xf32>, vector<512x16xf32> -> vector<512x16xf32>
    %c0_3 = arith.constant 0 : index
    %c0_4 = arith.constant 0 : index
    %3 = vector.load %arg4[%c0_3, %c0_4] : memref<1x16xf32, #tpu.memory_space<vmem>>, vector<1x16xf32>
    %4 = vector.broadcast %3 : vector<1x16xf32> to vector<512x16xf32>
    %5 = arith.addf %2, %4 : vector<512x16xf32>
    %cst_5 = arith.constant 0.000000e+00 : f32
    %6 = vector.broadcast %cst_5 : f32 to vector<512x16xf32>
    %7 = arith.maximumf %5, %6 : vector<512x16xf32>
    %c0_6 = arith.constant 0 : index
    %c0_7 = arith.constant 0 : index
    %8 = vector.load %arg2[%c0_6, %c0_7] : memref<8x512xf32, #tpu.memory_space<vmem>>, vector<8x512xf32>
    %cst_8 = arith.constant dense<0.000000e+00> : vector<8x16xf32>
    %9 = tpu.matmul %8, %7, %cst_8 {dimension_numbers = #tpu.dot_dimension_numbers<[1], [0], [0], [1], [0, 0, 1, 1], [], []>} : vector<8x512xf32>, vector<512x16xf32>, vector<8x16xf32> -> vector<8x16xf32>
    %c0_9 = arith.constant 0 : index
    %c0_10 = arith.constant 0 : index
    %10 = vector.load %arg5[%c0_9, %c0_10] : memref<16x32xf32, #tpu.memory_space<vmem>>, vector<16x32xf32>
    %cst_11 = arith.constant dense<0.000000e+00> : vector<8x32xf32>
    %11 = tpu.matmul %9, %10, %cst_11 {dimension_numbers = #tpu.dot_dimension_numbers<[1], [0], [0], [1], [0, 0, 1, 1], [], []>} : vector<8x16xf32>, vector<16x32xf32>, vector<8x32xf32> -> vector<8x32xf32>
    %c0_12 = arith.constant 0 : index
    %c0_13 = arith.constant 0 : index
    %12 = vector.load %arg6[%c0_12, %c0_13] : memref<1x32xf32, #tpu.memory_space<vmem>>, vector<1x32xf32>
    %13 = vector.broadcast %12 : vector<1x32xf32> to vector<8x32xf32>
    %14 = arith.addf %11, %13 : vector<8x32xf32>
    %c0_14 = arith.constant 0 : index
    %c0_15 = arith.constant 0 : index
    %15 = vector.load %arg0[%c0_14, %c0_15] : memref<64x1xi32, #tpu.memory_space<vmem>>, vector<64x1xi32>
    %16 = tpu.iota {dimensions = array<i32: 1>} : vector<64x64xi32>
    %17 = vector.broadcast %15 : vector<64x1xi32> to vector<64x64xi32>
    %18 = arith.cmpi eq, %16, %17 : vector<64x64xi32>
    %19 = arith.extui %18 : vector<64x64xi1> to vector<64x64xi32>
    %20 = arith.sitofp %19 : vector<64x64xi32> to vector<64x64xf32>
    %c0_16 = arith.constant 0 : index
    %c0_17 = arith.constant 0 : index
    %21 = vector.load %arg7[%c0_16, %c0_17] : memref<64x32xf32, #tpu.memory_space<vmem>>, vector<64x32xf32>
    %cst_18 = arith.constant dense<0.000000e+00> : vector<64x32xf32>
    %22 = tpu.matmul %20, %21, %cst_18 {dimension_numbers = #tpu.dot_dimension_numbers<[1], [0], [0], [1], [0, 0, 1, 1], [], []>} : vector<64x64xf32>, vector<64x32xf32>, vector<64x32xf32> -> vector<64x32xf32>
    %23 = tpu.concatenate %14, %22 in 0 : vector<8x32xf32>, vector<64x32xf32> -> vector<72x32xf32>
    %c0_19 = arith.constant 0 : index
    %c0_20 = arith.constant 0 : index
    %24 = vector.load %arg8[%c0_19, %c0_20] : memref<32x128xf32, #tpu.memory_space<vmem>>, vector<32x128xf32>
    %cst_21 = arith.constant dense<0.000000e+00> : vector<72x128xf32>
    %25 = tpu.matmul %23, %24, %cst_21 {dimension_numbers = #tpu.dot_dimension_numbers<[1], [0], [0], [1], [0, 0, 1, 1], [], []>} : vector<72x32xf32>, vector<32x128xf32>, vector<72x128xf32> -> vector<72x128xf32>
    %c0_22 = arith.constant 0 : index
    %c0_23 = arith.constant 0 : index
    %26 = vector.load %arg10[%c0_22, %c0_23] : memref<1x128xf32, #tpu.memory_space<vmem>>, vector<1x128xf32>
    %27 = vector.broadcast %26 : vector<1x128xf32> to vector<72x128xf32>
    %28 = arith.addf %25, %27 : vector<72x128xf32>
    %c0_24 = arith.constant 0 : index
    %c0_25 = arith.constant 0 : index
    %29 = vector.load %arg9[%c0_24, %c0_25] : memref<32x128xf32, #tpu.memory_space<vmem>>, vector<32x128xf32>
    %cst_26 = arith.constant 0.000000e+00 : f32
    %30 = vector.broadcast %cst_26 : f32 to vector<8x32xf32>
    %cst_27 = arith.constant 0.000000e+00 : f32
    %31 = vector.broadcast %cst_27 : f32 to vector<8x32xf32>
    %32 = vector.extract_strided_slice %28 {offsets = [0, 0], sizes = [8, 128], strides = [1, 1]} : vector<72x128xf32> to vector<8x128xf32>
    %cst_28 = arith.constant dense<0.000000e+00> : vector<8x128xf32>
    %33 = tpu.matmul %30, %29, %cst_28 {dimension_numbers = #tpu.dot_dimension_numbers<[1], [0], [0], [1], [0, 0, 1, 1], [], []>} : vector<8x32xf32>, vector<32x128xf32>, vector<8x128xf32> -> vector<8x128xf32>
    %34 = arith.addf %32, %33 : vector<8x128xf32>
    %35 = arith.negf %34 : vector<8x128xf32>
    %36 = math.exp %35 : vector<8x128xf32>
    %cst_29 = arith.constant 1.000000e+00 : f32
    %37 = vector.broadcast %cst_29 : f32 to vector<8x128xf32>
    %38 = arith.addf %37, %36 : vector<8x128xf32>
    %39 = arith.divf %37, %38 : vector<8x128xf32>
    %40 = math.tanh %34 : vector<8x128xf32>
    %41 = vector.extract_strided_slice %39 {offsets = [0, 0], sizes = [8, 32], strides = [1, 1]} : vector<8x128xf32> to vector<8x32xf32>
    %42 = vector.extract_strided_slice %39 {offsets = [0, 32], sizes = [8, 32], strides = [1, 1]} : vector<8x128xf32> to vector<8x32xf32>
    %43 = vector.extract_strided_slice %40 {offsets = [0, 64], sizes = [8, 32], strides = [1, 1]} : vector<8x128xf32> to vector<8x32xf32>
    %44 = vector.extract_strided_slice %39 {offsets = [0, 96], sizes = [8, 32], strides = [1, 1]} : vector<8x128xf32> to vector<8x32xf32>
    %45 = arith.mulf %42, %31 : vector<8x32xf32>
    %46 = arith.mulf %41, %43 : vector<8x32xf32>
    %47 = arith.addf %45, %46 : vector<8x32xf32>
    %48 = math.tanh %47 : vector<8x32xf32>
    %49 = arith.mulf %44, %48 : vector<8x32xf32>
    %50 = vector.extract_strided_slice %28 {offsets = [8, 0], sizes = [8, 128], strides = [1, 1]} : vector<72x128xf32> to vector<8x128xf32>
    %cst_30 = arith.constant dense<0.000000e+00> : vector<8x128xf32>
    %51 = tpu.matmul %49, %29, %cst_30 {dimension_numbers = #tpu.dot_dimension_numbers<[1], [0], [0], [1], [0, 0, 1, 1], [], []>} : vector<8x32xf32>, vector<32x128xf32>, vector<8x128xf32> -> vector<8x128xf32>
    %52 = arith.addf %50, %51 : vector<8x128xf32>
    %53 = arith.negf %52 : vector<8x128xf32>
    %54 = math.exp %53 : vector<8x128xf32>
    %cst_31 = arith.constant 1.000000e+00 : f32
    %55 = vector.broadcast %cst_31 : f32 to vector<8x128xf32>
    %56 = arith.addf %55, %54 : vector<8x128xf32>
    %57 = arith.divf %55, %56 : vector<8x128xf32>
    %58 = math.tanh %52 : vector<8x128xf32>
    %59 = vector.extract_strided_slice %57 {offsets = [0, 0], sizes = [8, 32], strides = [1, 1]} : vector<8x128xf32> to vector<8x32xf32>
    %60 = vector.extract_strided_slice %57 {offsets = [0, 32], sizes = [8, 32], strides = [1, 1]} : vector<8x128xf32> to vector<8x32xf32>
    %61 = vector.extract_strided_slice %58 {offsets = [0, 64], sizes = [8, 32], strides = [1, 1]} : vector<8x128xf32> to vector<8x32xf32>
    %62 = vector.extract_strided_slice %57 {offsets = [0, 96], sizes = [8, 32], strides = [1, 1]} : vector<8x128xf32> to vector<8x32xf32>
    %63 = arith.mulf %60, %47 : vector<8x32xf32>
    %64 = arith.mulf %59, %61 : vector<8x32xf32>
    %65 = arith.addf %63, %64 : vector<8x32xf32>
    %66 = math.tanh %65 : vector<8x32xf32>
    %67 = arith.mulf %62, %66 : vector<8x32xf32>
    %68 = vector.extract_strided_slice %28 {offsets = [16, 0], sizes = [8, 128], strides = [1, 1]} : vector<72x128xf32> to vector<8x128xf32>
    %cst_32 = arith.constant dense<0.000000e+00> : vector<8x128xf32>
    %69 = tpu.matmul %67, %29, %cst_32 {dimension_numbers = #tpu.dot_dimension_numbers<[1], [0], [0], [1], [0, 0, 1, 1], [], []>} : vector<8x32xf32>, vector<32x128xf32>, vector<8x128xf32> -> vector<8x128xf32>
    %70 = arith.addf %68, %69 : vector<8x128xf32>
    %71 = arith.negf %70 : vector<8x128xf32>
    %72 = math.exp %71 : vector<8x128xf32>
    %cst_33 = arith.constant 1.000000e+00 : f32
    %73 = vector.broadcast %cst_33 : f32 to vector<8x128xf32>
    %74 = arith.addf %73, %72 : vector<8x128xf32>
    %75 = arith.divf %73, %74 : vector<8x128xf32>
    %76 = math.tanh %70 : vector<8x128xf32>
    %77 = vector.extract_strided_slice %75 {offsets = [0, 0], sizes = [8, 32], strides = [1, 1]} : vector<8x128xf32> to vector<8x32xf32>
    %78 = vector.extract_strided_slice %75 {offsets = [0, 32], sizes = [8, 32], strides = [1, 1]} : vector<8x128xf32> to vector<8x32xf32>
    %79 = vector.extract_strided_slice %76 {offsets = [0, 64], sizes = [8, 32], strides = [1, 1]} : vector<8x128xf32> to vector<8x32xf32>
    %80 = vector.extract_strided_slice %75 {offsets = [0, 96], sizes = [8, 32], strides = [1, 1]} : vector<8x128xf32> to vector<8x32xf32>
    %81 = arith.mulf %78, %65 : vector<8x32xf32>
    %82 = arith.mulf %77, %79 : vector<8x32xf32>
    %83 = arith.addf %81, %82 : vector<8x32xf32>
    %84 = math.tanh %83 : vector<8x32xf32>
    %85 = arith.mulf %80, %84 : vector<8x32xf32>
    %86 = vector.extract_strided_slice %28 {offsets = [24, 0], sizes = [8, 128], strides = [1, 1]} : vector<72x128xf32> to vector<8x128xf32>
    %cst_34 = arith.constant dense<0.000000e+00> : vector<8x128xf32>
    %87 = tpu.matmul %85, %29, %cst_34 {dimension_numbers = #tpu.dot_dimension_numbers<[1], [0], [0], [1], [0, 0, 1, 1], [], []>} : vector<8x32xf32>, vector<32x128xf32>, vector<8x128xf32> -> vector<8x128xf32>
    %88 = arith.addf %86, %87 : vector<8x128xf32>
    %89 = arith.negf %88 : vector<8x128xf32>
    %90 = math.exp %89 : vector<8x128xf32>
    %cst_35 = arith.constant 1.000000e+00 : f32
    %91 = vector.broadcast %cst_35 : f32 to vector<8x128xf32>
    %92 = arith.addf %91, %90 : vector<8x128xf32>
    %93 = arith.divf %91, %92 : vector<8x128xf32>
    %94 = math.tanh %88 : vector<8x128xf32>
    %95 = vector.extract_strided_slice %93 {offsets = [0, 0], sizes = [8, 32], strides = [1, 1]} : vector<8x128xf32> to vector<8x32xf32>
    %96 = vector.extract_strided_slice %93 {offsets = [0, 32], sizes = [8, 32], strides = [1, 1]} : vector<8x128xf32> to vector<8x32xf32>
    %97 = vector.extract_strided_slice %94 {offsets = [0, 64], sizes = [8, 32], strides = [1, 1]} : vector<8x128xf32> to vector<8x32xf32>
    %98 = vector.extract_strided_slice %93 {offsets = [0, 96], sizes = [8, 32], strides = [1, 1]} : vector<8x128xf32> to vector<8x32xf32>
    %99 = arith.mulf %96, %83 : vector<8x32xf32>
    %100 = arith.mulf %95, %97 : vector<8x32xf32>
    %101 = arith.addf %99, %100 : vector<8x32xf32>
    %102 = math.tanh %101 : vector<8x32xf32>
    %103 = arith.mulf %98, %102 : vector<8x32xf32>
    %104 = vector.extract_strided_slice %28 {offsets = [32, 0], sizes = [8, 128], strides = [1, 1]} : vector<72x128xf32> to vector<8x128xf32>
    %cst_36 = arith.constant dense<0.000000e+00> : vector<8x128xf32>
    %105 = tpu.matmul %103, %29, %cst_36 {dimension_numbers = #tpu.dot_dimension_numbers<[1], [0], [0], [1], [0, 0, 1, 1], [], []>} : vector<8x32xf32>, vector<32x128xf32>, vector<8x128xf32> -> vector<8x128xf32>
    %106 = arith.addf %104, %105 : vector<8x128xf32>
    %107 = arith.negf %106 : vector<8x128xf32>
    %108 = math.exp %107 : vector<8x128xf32>
    %cst_37 = arith.constant 1.000000e+00 : f32
    %109 = vector.broadcast %cst_37 : f32 to vector<8x128xf32>
    %110 = arith.addf %109, %108 : vector<8x128xf32>
    %111 = arith.divf %109, %110 : vector<8x128xf32>
    %112 = math.tanh %106 : vector<8x128xf32>
    %113 = vector.extract_strided_slice %111 {offsets = [0, 0], sizes = [8, 32], strides = [1, 1]} : vector<8x128xf32> to vector<8x32xf32>
    %114 = vector.extract_strided_slice %111 {offsets = [0, 32], sizes = [8, 32], strides = [1, 1]} : vector<8x128xf32> to vector<8x32xf32>
    %115 = vector.extract_strided_slice %112 {offsets = [0, 64], sizes = [8, 32], strides = [1, 1]} : vector<8x128xf32> to vector<8x32xf32>
    %116 = vector.extract_strided_slice %111 {offsets = [0, 96], sizes = [8, 32], strides = [1, 1]} : vector<8x128xf32> to vector<8x32xf32>
    %117 = arith.mulf %114, %101 : vector<8x32xf32>
    %118 = arith.mulf %113, %115 : vector<8x32xf32>
    %119 = arith.addf %117, %118 : vector<8x32xf32>
    %120 = math.tanh %119 : vector<8x32xf32>
    %121 = arith.mulf %116, %120 : vector<8x32xf32>
    %122 = vector.extract_strided_slice %28 {offsets = [40, 0], sizes = [8, 128], strides = [1, 1]} : vector<72x128xf32> to vector<8x128xf32>
    %cst_38 = arith.constant dense<0.000000e+00> : vector<8x128xf32>
    %123 = tpu.matmul %121, %29, %cst_38 {dimension_numbers = #tpu.dot_dimension_numbers<[1], [0], [0], [1], [0, 0, 1, 1], [], []>} : vector<8x32xf32>, vector<32x128xf32>, vector<8x128xf32> -> vector<8x128xf32>
    %124 = arith.addf %122, %123 : vector<8x128xf32>
    %125 = arith.negf %124 : vector<8x128xf32>
    %126 = math.exp %125 : vector<8x128xf32>
    %cst_39 = arith.constant 1.000000e+00 : f32
    %127 = vector.broadcast %cst_39 : f32 to vector<8x128xf32>
    %128 = arith.addf %127, %126 : vector<8x128xf32>
    %129 = arith.divf %127, %128 : vector<8x128xf32>
    %130 = math.tanh %124 : vector<8x128xf32>
    %131 = vector.extract_strided_slice %129 {offsets = [0, 0], sizes = [8, 32], strides = [1, 1]} : vector<8x128xf32> to vector<8x32xf32>
    %132 = vector.extract_strided_slice %129 {offsets = [0, 32], sizes = [8, 32], strides = [1, 1]} : vector<8x128xf32> to vector<8x32xf32>
    %133 = vector.extract_strided_slice %130 {offsets = [0, 64], sizes = [8, 32], strides = [1, 1]} : vector<8x128xf32> to vector<8x32xf32>
    %134 = vector.extract_strided_slice %129 {offsets = [0, 96], sizes = [8, 32], strides = [1, 1]} : vector<8x128xf32> to vector<8x32xf32>
    %135 = arith.mulf %132, %119 : vector<8x32xf32>
    %136 = arith.mulf %131, %133 : vector<8x32xf32>
    %137 = arith.addf %135, %136 : vector<8x32xf32>
    %138 = math.tanh %137 : vector<8x32xf32>
    %139 = arith.mulf %134, %138 : vector<8x32xf32>
    %140 = vector.extract_strided_slice %28 {offsets = [48, 0], sizes = [8, 128], strides = [1, 1]} : vector<72x128xf32> to vector<8x128xf32>
    %cst_40 = arith.constant dense<0.000000e+00> : vector<8x128xf32>
    %141 = tpu.matmul %139, %29, %cst_40 {dimension_numbers = #tpu.dot_dimension_numbers<[1], [0], [0], [1], [0, 0, 1, 1], [], []>} : vector<8x32xf32>, vector<32x128xf32>, vector<8x128xf32> -> vector<8x128xf32>
    %142 = arith.addf %140, %141 : vector<8x128xf32>
    %143 = arith.negf %142 : vector<8x128xf32>
    %144 = math.exp %143 : vector<8x128xf32>
    %cst_41 = arith.constant 1.000000e+00 : f32
    %145 = vector.broadcast %cst_41 : f32 to vector<8x128xf32>
    %146 = arith.addf %145, %144 : vector<8x128xf32>
    %147 = arith.divf %145, %146 : vector<8x128xf32>
    %148 = math.tanh %142 : vector<8x128xf32>
    %149 = vector.extract_strided_slice %147 {offsets = [0, 0], sizes = [8, 32], strides = [1, 1]} : vector<8x128xf32> to vector<8x32xf32>
    %150 = vector.extract_strided_slice %147 {offsets = [0, 32], sizes = [8, 32], strides = [1, 1]} : vector<8x128xf32> to vector<8x32xf32>
    %151 = vector.extract_strided_slice %148 {offsets = [0, 64], sizes = [8, 32], strides = [1, 1]} : vector<8x128xf32> to vector<8x32xf32>
    %152 = vector.extract_strided_slice %147 {offsets = [0, 96], sizes = [8, 32], strides = [1, 1]} : vector<8x128xf32> to vector<8x32xf32>
    %153 = arith.mulf %150, %137 : vector<8x32xf32>
    %154 = arith.mulf %149, %151 : vector<8x32xf32>
    %155 = arith.addf %153, %154 : vector<8x32xf32>
    %156 = math.tanh %155 : vector<8x32xf32>
    %157 = arith.mulf %152, %156 : vector<8x32xf32>
    %158 = vector.extract_strided_slice %28 {offsets = [56, 0], sizes = [8, 128], strides = [1, 1]} : vector<72x128xf32> to vector<8x128xf32>
    %cst_42 = arith.constant dense<0.000000e+00> : vector<8x128xf32>
    %159 = tpu.matmul %157, %29, %cst_42 {dimension_numbers = #tpu.dot_dimension_numbers<[1], [0], [0], [1], [0, 0, 1, 1], [], []>} : vector<8x32xf32>, vector<32x128xf32>, vector<8x128xf32> -> vector<8x128xf32>
    %160 = arith.addf %158, %159 : vector<8x128xf32>
    %161 = arith.negf %160 : vector<8x128xf32>
    %162 = math.exp %161 : vector<8x128xf32>
    %cst_43 = arith.constant 1.000000e+00 : f32
    %163 = vector.broadcast %cst_43 : f32 to vector<8x128xf32>
    %164 = arith.addf %163, %162 : vector<8x128xf32>
    %165 = arith.divf %163, %164 : vector<8x128xf32>
    %166 = math.tanh %160 : vector<8x128xf32>
    %167 = vector.extract_strided_slice %165 {offsets = [0, 0], sizes = [8, 32], strides = [1, 1]} : vector<8x128xf32> to vector<8x32xf32>
    %168 = vector.extract_strided_slice %165 {offsets = [0, 32], sizes = [8, 32], strides = [1, 1]} : vector<8x128xf32> to vector<8x32xf32>
    %169 = vector.extract_strided_slice %166 {offsets = [0, 64], sizes = [8, 32], strides = [1, 1]} : vector<8x128xf32> to vector<8x32xf32>
    %170 = vector.extract_strided_slice %165 {offsets = [0, 96], sizes = [8, 32], strides = [1, 1]} : vector<8x128xf32> to vector<8x32xf32>
    %171 = arith.mulf %168, %155 : vector<8x32xf32>
    %172 = arith.mulf %167, %169 : vector<8x32xf32>
    %173 = arith.addf %171, %172 : vector<8x32xf32>
    %174 = math.tanh %173 : vector<8x32xf32>
    %175 = arith.mulf %170, %174 : vector<8x32xf32>
    %176 = vector.extract_strided_slice %28 {offsets = [64, 0], sizes = [8, 128], strides = [1, 1]} : vector<72x128xf32> to vector<8x128xf32>
    %cst_44 = arith.constant dense<0.000000e+00> : vector<8x128xf32>
    %177 = tpu.matmul %175, %29, %cst_44 {dimension_numbers = #tpu.dot_dimension_numbers<[1], [0], [0], [1], [0, 0, 1, 1], [], []>} : vector<8x32xf32>, vector<32x128xf32>, vector<8x128xf32> -> vector<8x128xf32>
    %178 = arith.addf %176, %177 : vector<8x128xf32>
    %179 = arith.negf %178 : vector<8x128xf32>
    %180 = math.exp %179 : vector<8x128xf32>
    %cst_45 = arith.constant 1.000000e+00 : f32
    %181 = vector.broadcast %cst_45 : f32 to vector<8x128xf32>
    %182 = arith.addf %181, %180 : vector<8x128xf32>
    %183 = arith.divf %181, %182 : vector<8x128xf32>
    %184 = math.tanh %178 : vector<8x128xf32>
    %185 = vector.extract_strided_slice %183 {offsets = [0, 0], sizes = [8, 32], strides = [1, 1]} : vector<8x128xf32> to vector<8x32xf32>
    %186 = vector.extract_strided_slice %183 {offsets = [0, 32], sizes = [8, 32], strides = [1, 1]} : vector<8x128xf32> to vector<8x32xf32>
    %187 = vector.extract_strided_slice %184 {offsets = [0, 64], sizes = [8, 32], strides = [1, 1]} : vector<8x128xf32> to vector<8x32xf32>
    %188 = vector.extract_strided_slice %183 {offsets = [0, 96], sizes = [8, 32], strides = [1, 1]} : vector<8x128xf32> to vector<8x32xf32>
    %189 = arith.mulf %186, %173 : vector<8x32xf32>
    %190 = arith.mulf %185, %187 : vector<8x32xf32>
    %191 = arith.addf %189, %190 : vector<8x32xf32>
    %192 = math.tanh %191 : vector<8x32xf32>
    %193 = arith.mulf %188, %192 : vector<8x32xf32>
    %194 = tpu.concatenate %49, %67, %85, %103, %121, %139, %157, %175, %193 in 0 : vector<8x32xf32>, vector<8x32xf32>, vector<8x32xf32>, vector<8x32xf32>, vector<8x32xf32>, vector<8x32xf32>, vector<8x32xf32>, vector<8x32xf32>, vector<8x32xf32> -> vector<72x32xf32>
    %c0_46 = arith.constant 0 : index
    %c0_47 = arith.constant 0 : index
    %195 = vector.load %arg11[%c0_46, %c0_47] : memref<32x128xf32, #tpu.memory_space<vmem>>, vector<32x128xf32>
    %cst_48 = arith.constant dense<0.000000e+00> : vector<72x128xf32>
    %196 = tpu.matmul %194, %195, %cst_48 {dimension_numbers = #tpu.dot_dimension_numbers<[1], [0], [0], [1], [0, 0, 1, 1], [], []>} : vector<72x32xf32>, vector<32x128xf32>, vector<72x128xf32> -> vector<72x128xf32>
    %c0_49 = arith.constant 0 : index
    %c0_50 = arith.constant 0 : index
    %197 = vector.load %arg12[%c0_49, %c0_50] : memref<1x128xf32, #tpu.memory_space<vmem>>, vector<1x128xf32>
    %198 = vector.broadcast %197 : vector<1x128xf32> to vector<72x128xf32>
    %199 = arith.addf %196, %198 : vector<72x128xf32>
    %c0_51 = arith.constant 0 : index
    %c0_52 = arith.constant 0 : index
    %200 = vector.load %arg13[%c0_51, %c0_52] : memref<72x128xf32, #tpu.memory_space<vmem>>, vector<72x128xf32>
    tpu.vector_store %arg13[%c0_51, %c0_52], %199 {strides = array<i32>} : memref<72x128xf32, #tpu.memory_space<vmem>>, vector<72x128xf32>,
    return
  }
}

</mosaic_0001>

<bundles_post_ra>
// kernel: image_captioner_forward.1
= control target key start
LH: loop header
LB: loop body
LE: loop exit
PB: predicated region body
PF: predicated region fallthrough
CT: control target
= control target key end

     0   :  { %vm116_vm0 = vcmask 261120   ;;  %vm672_vm1 = vcmask 130048   ;;  %vm762_vm3 = vcmask 523264   ;;  %s2587_s3 = inlined_call_operand.vmem [shape: f32[32,16], index: 3, kind: input, shape index: {}]   ;;  %s2588_s1 = inlined_call_operand.vmem [shape: f32[512,32], index: 1, kind: input, shape index: {}]   ;;  %s2589_s4 = inlined_call_operand.vmem [shape: f32[1,16], index: 4, kind: input, shape index: {}]   ;;  %s2590_s2 = inlined_call_operand.vmem [shape: f32[8,512], index: 2, kind: input, shape index: {}]   ;;  %s2591_s6 = inlined_call_operand.vmem [shape: f32[1,32], index: 6, kind: input, shape index: {}]   ;;  %s2592_s5 = inlined_call_operand.vmem [shape: f32[16,32], index: 5, kind: input, shape index: {}]   ;;  %s2593_s8 = inlined_call_operand.vmem [shape: f32[32,128], index: 8, kind: input, shape index: {}]   ;;  %s2594_s10 = inlined_call_operand.vmem [shape: f32[1,128], index: 10, kind: input, shape index: {}]   ;;  %s2595_s9 = inlined_call_operand.vmem [shape: f32[32,128], index: 9, kind: input, shape index: {}]   ;;  %s2596_s0 = inlined_call_operand.vmem [shape: s32[64,1], index: 0, kind: input, shape index: {}]   ;;  %s2597_s7 = inlined_call_operand.vmem [shape: f32[64,32], index: 7, kind: input, shape index: {}]   ;;  %s2598_s11 = inlined_call_operand.vmem [shape: f32[32,128], index: 11, kind: input, shape index: {}]   ;;  %s2599_s12 = inlined_call_operand.vmem [shape: f32[1,128], index: 12, kind: input, shape index: {}]   ;;  %s2600_s13 = inlined_call_operand.vmem [shape: f32[72,128], index: 13, kind: output, shape index: {}]  }
   0x1   :  { %v111_v0 = vld [vmem:[%s2587_s3 + $0x18] sm:$0xff]  ;;  %v110_v1 = vld [vmem:[%s2587_s3 + $0x10] sm:$0xff]  ;;  %v109_v2 = vld [vmem:[%s2587_s3 + $0x8] sm:$0xff] }
   0x2   :  { %321 = vmatpush.msra.mxu0 %v111_v0  ;;  %1662 = vmatpush.msra.mxu1 %v111_v0  ;;  %v108_v3 = vld [vmem:[%s2587_s3] sm:$0xff]  ;;  %v73_v5 = vld [vmem:[%s2588_s1 + $0xe8] sm:$0xff]  ;;  %v74_v7 = vld [vmem:[%s2588_s1 + $0xf0] sm:$0xff] }
   0x3   :  { %1663 = vmatpush.msra.mxu2 %v111_v0  ;;  %1664 = vmatpush.msra.mxu3 %v111_v0  ;;  %v44_v4 = vld [vmem:[%s2588_s1] sm:$0xff]  ;;  %v45_v6 = vld [vmem:[%s2588_s1 + $0x8] sm:$0xff]  ;;  %v46_v9 = vld [vmem:[%s2588_s1 + $0x10] sm:$0xff] }
   0x4   :  { %322 = vmatpush.msra.mxu0 %v110_v1  ;;  %1665 = vmatpush.msra.mxu1 %v110_v1  ;;  %v89_v8 = vld [vmem:[%s2588_s1 + $0x168] sm:$0xff]  ;;  %v75_v10 = vld [vmem:[%s2588_s1 + $0xf8] sm:$0xff]  ;;  %v90_v11 = vld [vmem:[%s2588_s1 + $0x170] sm:$0xff] }
   0x5   :  { %1666 = vmatpush.msra.mxu2 %v110_v1  ;;  %1667 = vmatpush.msra.mxu3 %v110_v1  ;;  %v47_v12 = vld [vmem:[%s2588_s1 + $0x18] sm:$0xff]  ;;  %v76_v13 = vld [vmem:[%s2588_s1 + $0x100] sm:$0xff]  ;;  %v77_v16 = vld [vmem:[%s2588_s1 + $0x108] sm:$0xff] }
   0x6   :  { %323 = vmatpush.msra.mxu0 %v109_v2  ;;  %1668 = vmatpush.msra.mxu1 %v109_v2  ;;  %v91_v14 = vld [vmem:[%s2588_s1 + $0x178] sm:$0xff]  ;;  %v48_v15 = vld [vmem:[%s2588_s1 + $0x20] sm:$0xff]  ;;  %v49_v18 = vld [vmem:[%s2588_s1 + $0x28] sm:$0xff] }
   0x7   :  { %1669 = vmatpush.msra.mxu2 %v109_v2  ;;  %1670 = vmatpush.msra.mxu3 %v109_v2  ;;  %v92_v17 = vld [vmem:[%s2588_s1 + $0x180] sm:$0xff]  ;;  %v78_v19 = vld [vmem:[%s2588_s1 + $0x110] sm:$0xff]  ;;  %v93_v20 = vld [vmem:[%s2588_s1 + $0x188] sm:$0xff] }
   0x8   :  { %324 = vmatpush.msra.mxu0 %v108_v3  ;;  %1671 = vmatpush.msra.mxu1 %v108_v3  ;;  %v50_v21 = vld [vmem:[%s2588_s1 + $0x30] sm:$0xff]  ;;  %v79_v22 = vld [vmem:[%s2588_s1 + $0x118] sm:$0xff]  ;;  %v80_v25 = vld [vmem:[%s2588_s1 + $0x120] sm:$0xff] }
   0x9   :  { %1546 = vmatmul.msk.f32.vlgmr.msra.gmra.mxu0 %vm116_vm0, %v44_v4  ;;  %1575 = vmatmul.msk.f32.vlgmr.msra.gmra.mxu1 %vm116_vm0, %v73_v5  ;;  %v94_v23 = vld [vmem:[%s2588_s1 + $0x190] sm:$0xff]  ;;  %v51_v24 = vld [vmem:[%s2588_s1 + $0x38] sm:$0xff]  ;;  %v52_v27 = vld [vmem:[%s2588_s1 + $0x40] sm:$0xff] }
   0xa   :  { %1672 = vmatpush.msra.mxu2 %v108_v3  ;;  %1673 = vmatpush.msra.mxu3 %v108_v3  ;;  %v95_v26 = vld [vmem:[%s2588_s1 + $0x198] sm:$0xff]  ;;  %v81_v28 = vld [vmem:[%s2588_s1 + $0x128] sm:$0xff]  ;;  %v96_v29 = vld [vmem:[%s2588_s1 + $0x1a0] sm:$0xff] }
   0xb   :  { %1591 = vmatmul.msk.f32.vlgmr.msra.gmra.mxu2 %vm116_vm0, %v89_v8  ;;  %v53_v30 = vld [vmem:[%s2588_s1 + $0x48] sm:$0xff]  ;;  %v82_v31 = vld [vmem:[%s2588_s1 + $0x130] sm:$0xff]  ;;  %v83_v34 = vld [vmem:[%s2588_s1 + $0x138] sm:$0xff] }
   0xc   :  { %v97_v32 = vld [vmem:[%s2588_s1 + $0x1a8] sm:$0xff]  ;;  %v54_v33 = vld [vmem:[%s2588_s1 + $0x50] sm:$0xff]  ;;  %v55_v36 = vld [vmem:[%s2588_s1 + $0x58] sm:$0xff] }
   0xd   :  { %v98_v35 = vld [vmem:[%s2588_s1 + $0x1b0] sm:$0xff]  ;;  %v84_v37 = vld [vmem:[%s2588_s1 + $0x140] sm:$0xff]  ;;  %v99_v38 = vld [vmem:[%s2588_s1 + $0x1b8] sm:$0xff] }
   0xe   :  { %v104_v39 = vld [vmem:[%s2588_s1 + $0x1e0] sm:$0xff]  ;;  %v85_v41 = vld [vmem:[%s2588_s1 + $0x148] sm:$0xff]  ;;  %v86_v45 = vld [vmem:[%s2588_s1 + $0x150] sm:$0xff] }
   0xf   :  { %1606 = vmatmul.msk.f32.vlgmr.msra.gmra.mxu3 %vm116_vm0, %v104_v39  ;;  %v56_v40 = vld [vmem:[%s2588_s1 + $0x60] sm:$0xff]  ;;  %v105_v43 = vld [vmem:[%s2588_s1 + $0x1e8] sm:$0xff]  ;;  %v106_v47 = vld [vmem:[%s2588_s1 + $0x1f0] sm:$0xff] }
  0x10   :  { %v100_v42 = vld [vmem:[%s2588_s1 + $0x1c0] sm:$0xff]  ;;  %v57_v44 = vld [vmem:[%s2588_s1 + $0x68] sm:$0xff]  ;;  %v58_v48 = vld [vmem:[%s2588_s1 + $0x70] sm:$0xff] }
  0x11   :  { %1547 = vmatmul.msk.f32.gmra.mxu0 %vm116_vm0, %v45_v6  ;;  %1576 = vmatmul.msk.f32.gmra.mxu1 %vm116_vm0, %v74_v7  ;;  %v101_v46 = vld [vmem:[%s2588_s1 + $0x1c8] sm:$0xff]  ;;  %v87_v49 = vld [vmem:[%s2588_s1 + $0x158] sm:$0xff]  ;;  %v102_v50 = vld [vmem:[%s2588_s1 + $0x1d0] sm:$0xff] }
  0x12   :  { %v107_v51 = vld [vmem:[%s2588_s1 + $0x1f8] sm:$0xff]  ;;  %v88_v53 = vld [vmem:[%s2588_s1 + $0x160] sm:$0xff]  ;;  %v61_v59 = vld [vmem:[%s2588_s1 + $0x88] sm:$0xff] }
  0x13   :  { %1592 = vmatmul.msk.f32.gmra.mxu2 %vm116_vm0, %v90_v11  ;;  %v59_v52 = vld [vmem:[%s2588_s1 + $0x78] sm:$0xff]  ;;  %v60_v56 = vld [vmem:[%s2588_s1 + $0x80] sm:$0xff]  ;;  %v62_v63 = vld [vmem:[%s2588_s1 + $0x90] sm:$0xff] }
  0x14   :  { %v103_v54 = vld [vmem:[%s2588_s1 + $0x1d8] sm:$0xff]  ;;  %v64_v6 = vld [vmem:[%s2588_s1 + $0xa0] sm:$0xff]  ;;  %v65_v11 = vld [vmem:[%s2588_s1 + $0xa8] sm:$0xff] }
  0x15   :  { %v63_v3 = vld [vmem:[%s2588_s1 + $0x98] sm:$0xff] }
  0x17   :  { %1607 = vmatmul.msk.f32.gmra.mxu3 %vm116_vm0, %v105_v43 }
  0x19   :  { %1548 = vmatmul.msk.f32.gmra.mxu0 %vm116_vm0, %v46_v9  ;;  %1577 = vmatmul.msk.f32.gmra.mxu1 %vm116_vm0, %v75_v10  ;;  %v2084_v9 = vld [vmem:[%s2589_s4] ss:$0 sm:$0xff] }
  0x1b   :  { %1593 = vmatmul.msk.f32.gmra.mxu2 %vm116_vm0, %v91_v14 }
  0x1f   :  { %1608 = vmatmul.msk.f32.gmra.mxu3 %vm116_vm0, %v106_v47 }
  0x21   :  { %1549 = vmatmul.msk.f32.gmra.mxu0 %vm116_vm0, %v47_v12  ;;  %1578 = vmatmul.msk.f32.gmra.mxu1 %vm116_vm0, %v76_v13 }
  0x23   :  { %1594 = vmatmul.msk.f32.gmra.mxu2 %vm116_vm0, %v92_v17 }
  0x27   :  { %1609 = vmatmul.msk.f32.gmra.mxu3 %vm116_vm0, %v107_v51 }
  0x29   :  { %1550 = vmatmul.msk.f32.gmra.mxu0 %vm116_vm0, %v48_v15  ;;  %1579 = vmatmul.msk.f32.gmra.mxu1 %vm116_vm0, %v77_v16 }
  0x2b   :  { %1595 = vmatmul.msk.f32.gmra.mxu2 %vm116_vm0, %v93_v20 }
  0x31   :  { %1551 = vmatmul.msk.f32.gmra.mxu0 %vm116_vm0, %v49_v18  ;;  %1580 = vmatmul.msk.f32.gmra.mxu1 %vm116_vm0, %v78_v19  ;;  %v66_v19 = vld [vmem:[%s2588_s1 + $0xb0] sm:$0xff] }
  0x33   :  { %1596 = vmatmul.msk.f32.gmra.mxu2 %vm116_vm0, %v94_v23  ;;  %v67_v23 = vld [vmem:[%s2588_s1 + $0xb8] sm:$0xff] }
  0x39   :  { %1552 = vmatmul.msk.f32.gmra.mxu0 %vm116_vm0, %v50_v21  ;;  %1581 = vmatmul.msk.f32.gmra.mxu1 %vm116_vm0, %v79_v22 }
  0x3b   :  { %1597 = vmatmul.msk.f32.gmra.mxu2 %vm116_vm0, %v95_v26 }
  0x41   :  { %1553 = vmatmul.msk.f32.gmra.mxu0 %vm116_vm0, %v51_v24  ;;  %1582 = vmatmul.msk.f32.gmra.mxu1 %vm116_vm0, %v80_v25 }
  0x43   :  { %1598 = vmatmul.msk.f32.gmra.mxu2 %vm116_vm0, %v96_v29 }
  0x49   :  { %1554 = vmatmul.msk.f32.gmra.mxu0 %vm116_vm0, %v52_v27  ;;  %1583 = vmatmul.msk.f32.gmra.mxu1 %vm116_vm0, %v81_v28  ;;  %v68_v27 = vld [vmem:[%s2588_s1 + $0xc0] sm:$0xff] }
  0x4b   :  { %1599 = vmatmul.msk.f32.gmra.mxu2 %vm116_vm0, %v97_v32 }
  0x51   :  { %1555 = vmatmul.msk.f32.gmra.mxu0 %vm116_vm0, %v53_v30  ;;  %1584 = vmatmul.msk.f32.gmra.mxu1 %vm116_vm0, %v82_v31  ;;  %v69_v30 = vld [vmem:[%s2588_s1 + $0xc8] sm:$0xff] }
  0x53   :  { %1600 = vmatmul.msk.f32.gmra.mxu2 %vm116_vm0, %v98_v35 }
  0x59   :  { %1556 = vmatmul.msk.f32.gmra.mxu0 %vm116_vm0, %v54_v33  ;;  %1585 = vmatmul.msk.f32.gmra.mxu1 %vm116_vm0, %v83_v34 }
  0x5b   :  { %1601 = vmatmul.msk.f32.gmra.mxu2 %vm116_vm0, %v99_v38 }
  0x61   :  { %1557 = vmatmul.msk.f32.gmra.mxu0 %vm116_vm0, %v55_v36  ;;  %1586 = vmatmul.msk.f32.gmra.mxu1 %vm116_vm0, %v84_v37  ;;  %v70_v36 = vld [vmem:[%s2588_s1 + $0xd0] sm:$0xff] }
  0x63   :  { %1602 = vmatmul.msk.f32.gmra.mxu2 %vm116_vm0, %v100_v42 }
  0x69   :  { %1558 = vmatmul.msk.f32.gmra.mxu0 %vm116_vm0, %v56_v40  ;;  %1587 = vmatmul.msk.f32.gmra.mxu1 %vm116_vm0, %v85_v41 }
  0x6b   :  { %1603 = vmatmul.msk.f32.gmra.mxu2 %vm116_vm0, %v101_v46 }
  0x71   :  { %1559 = vmatmul.msk.f32.gmra.mxu0 %vm116_vm0, %v57_v44  ;;  %1588 = vmatmul.msk.f32.gmra.mxu1 %vm116_vm0, %v86_v45  ;;  %v71_v45 = vld [vmem:[%s2588_s1 + $0xd8] sm:$0xff] }
  0x73   :  { %1604 = vmatmul.msk.f32.gmra.mxu2 %vm116_vm0, %v102_v50  ;;  %v72_v50 = vld [vmem:[%s2588_s1 + $0xe0] sm:$0xff] }
  0x79   :  { %1560 = vmatmul.msk.f32.gmra.mxu0 %vm116_vm0, %v58_v48  ;;  %1589 = vmatmul.msk.f32.gmra.mxu1 %vm116_vm0, %v87_v49 }
  0x7b   :  { %1605 = vmatmul.msk.f32.gmra.mxu2 %vm116_vm0, %v103_v54 }
  0x81   :  { %1561 = vmatmul.msk.f32.gmra.mxu0 %vm116_vm0, %v59_v52  ;;  %1590 = vmatmul.msk.f32.gmra.mxu1 %vm116_vm0, %v88_v53 }
  0x86   :  { %v2047_v55 = vpop.f32.mrf.mxu0  ;;  %v413_v57 = vpop.f32.mrf.mxu1 }
  0x87   :  { %v414_v32 = vadd.f32 %v2084_v9, %v413_v57 }
  0x89   :  { %1562 = vmatmul.msk.f32.gmra.mxu0 %vm116_vm0, %v60_v56  ;;  %v547_v34 = vmax.f32 %v414_v32, 0.0 }
  0x8e   :  { %v2053_v58 = vpop.f32.mrf.mxu0  ;;  %v416_v60 = vpop.f32.mrf.mxu1 }
  0x8f   :  { %v461_v61 = vpop.f32.mrf.mxu2  ;;  %v417_v13 = vadd.f32 %v2084_v9, %v416_v60 }
  0x90   :  { %v462_v41 = vadd.f32 %v2084_v9, %v461_v61 }
  0x91   :  { %1563 = vmatmul.msk.f32.gmra.mxu0 %vm116_vm0, %v61_v59  ;;  %v548_v16 = vmax.f32 %v417_v13, 0.0 }
  0x92   :  { %v563_v47 = vmax.f32 %v462_v41, 0.0  ;;  %v2160_v60 = vpop.f32.mrf.mxu3 }
  0x96   :  { %v2059_v62 = vpop.f32.mrf.mxu0  ;;  %v419_v0 = vpop.f32.mrf.mxu1 }
  0x97   :  { %v464_v1 = vpop.f32.mrf.mxu2  ;;  %v420_v14 = vadd.f32 %v2084_v9, %v419_v0 }
  0x98   :  { %v465_v39 = vadd.f32 %v2084_v9, %v464_v1 }
  0x99   :  { %1564 = vmatmul.msk.f32.gmra.mxu0 %vm116_vm0, %v62_v63  ;;  %v549_v17 = vmax.f32 %v420_v14, 0.0 }
  0x9a   :  { %v564_v43 = vmax.f32 %v465_v39, 0.0 }
  0x9b   :  { %606 = vmatpush.msrb.mxu2 %v549_v17 }
  0x9d   :  { %607 = vmatpush.msrb.mxu2 %v548_v16 }
  0x9e   :  { %v2065_v2 = vpop.f32.mrf.mxu0  ;;  %v2070_v4 = vpop.f32.mrf.mxu1 }
  0x9f   :  { %v467_v8 = vpop.f32.mrf.mxu2  ;;  %608 = vmatpush.msrb.mxu2 %v547_v34  ;;  %v2173_v34 = vpop.f32.mrf.mxu3 }
  0xa0   :  { %v468_v38 = vadd.f32 %v2084_v9, %v467_v8 }
  0xa1   :  { %1565 = vmatmul.msk.f32.gmra.mxu0 %vm116_vm0, %v63_v3 }
  0xa2   :  { %v565_v42 = vmax.f32 %v468_v38, 0.0 }
  0xa4   :  { %626 = vmatpush.msrb.mxu3 %v565_v42 }
  0xa6   :  { %v2073_v5 = vpop.f32.mrf.mxu0  ;;  %v2078_v7 = vpop.f32.mrf.mxu1  ;;  %627 = vmatpush.msrb.mxu3 %v564_v43 }
  0xa7   :  { %v2096_v15 = vpop.f32.mrf.mxu2 }
  0xa8   :  { %628 = vmatpush.msrb.mxu3 %v563_v47 }
  0xa9   :  { %1566 = vmatmul.msk.f32.gmra.mxu0 %vm116_vm0, %v64_v6 }
  0xae   :  { %v2086_v10 = vpop.f32.mrf.mxu0  ;;  %v2091_v12 = vpop.f32.mrf.mxu1 }
  0xaf   :  { %v2106_v21 = vpop.f32.mrf.mxu2 }
  0xb1   :  { %1567 = vmatmul.msk.f32.gmra.mxu0 %vm116_vm0, %v65_v11 }
  0xb6   :  { %v2098_v18 = vpop.f32.mrf.mxu0  ;;  %v2103_v20 = vpop.f32.mrf.mxu1 }
  0xb7   :  { %v2116_v25 = vpop.f32.mrf.mxu2 }
  0xb9   :  { %1568 = vmatmul.msk.f32.gmra.mxu0 %vm116_vm0, %v66_v19 }
  0xbe   :  { %v2108_v22 = vpop.f32.mrf.mxu0  ;;  %v2113_v24 = vpop.f32.mrf.mxu1 }
  0xbf   :  { %v2134_v33 = vpop.f32.mrf.mxu2 }
  0xc1   :  { %1569 = vmatmul.msk.f32.gmra.mxu0 %vm116_vm0, %v67_v23 }
  0xc6   :  { %v2118_v26 = vpop.f32.mrf.mxu0  ;;  %v2123_v28 = vpop.f32.mrf.mxu1 }
  0xc7   :  { %v2143_v40 = vpop.f32.mrf.mxu2 }
  0xc9   :  { %1570 = vmatmul.msk.f32.gmra.mxu0 %vm116_vm0, %v68_v27 }
  0xce   :  { %v2126_v29 = vpop.f32.mrf.mxu0  ;;  %v2131_v31 = vpop.f32.mrf.mxu1 }
  0xcf   :  { %v2150_v48 = vpop.f32.mrf.mxu2 }
  0xd1   :  { %1571 = vmatmul.msk.f32.gmra.mxu0 %vm116_vm0, %v69_v30 }
  0xd6   :  { %v356_v35 = vpop.f32.mrf.mxu0  ;;  %v443_v37 = vpop.f32.mrf.mxu1 }
  0xd7   :  { %v2156_v52 = vpop.f32.mrf.mxu2  ;;  %v444_v39 = vadd.f32 %v2084_v9, %v443_v37  ;;  %v357_v43 = vadd.f32 %v2084_v9, %v356_v35  ;;  %v438_v37 = vadd.f32 %v2084_v9, %v2123_v28  ;;  %v351_v35 = vadd.f32 %v2084_v9, %v2118_v26 }
  0xd8   :  { %v432_v28 = vadd.f32 %v2084_v9, %v2103_v20 }
  0xd9   :  { %1572 = vmatmul.msk.f32.gmra.mxu0 %vm116_vm0, %v70_v36 }
  0xde   :  { %v359_v44 = vpop.f32.mrf.mxu0  ;;  %v446_v46 = vpop.f32.mrf.mxu1 }
  0xdf   :  { %v2158_v59 = vpop.f32.mrf.mxu2  ;;  %v447_v30 = vadd.f32 %v2084_v9, %v446_v46  ;;  %v360_v36 = vadd.f32 %v2084_v9, %v359_v44  ;;  %v441_v46 = vadd.f32 %v2084_v9, %v2131_v31  ;;  %v354_v44 = vadd.f32 %v2084_v9, %v2126_v29 }
  0xe0   :  { %v435_v31 = vadd.f32 %v2084_v9, %v2113_v24  ;;  %v348_v29 = vadd.f32 %v2084_v9, %v2108_v22  ;;  %v345_v24 = vadd.f32 %v2084_v9, %v2098_v18  ;;  %v342_v22 = vadd.f32 %v2084_v9, %v2086_v10 }
  0xe1   :  { %1573 = vmatmul.msk.f32.gmra.mxu0 %vm116_vm0, %v71_v45  ;;  %v558_v47 = vmax.f32 %v447_v30, 0.0  ;;  %v426_v18 = vadd.f32 %v2084_v9, %v2078_v7  ;;  %v423_v10 = vadd.f32 %v2084_v9, %v2070_v4 }
  0xe2   :  { %v525_v20 = vmax.f32 %v348_v29, 0.0  ;;  %v489_v29 = vadd.f32 %v2084_v9, %v2156_v52  ;;  %v477_v52 = vadd.f32 %v2084_v9, %v2116_v25 }
  0xe6   :  { %v362_v49 = vpop.f32.mrf.mxu0  ;;  %v449_v51 = vpop.f32.mrf.mxu1 }
  0xe7   :  { %v450_v11 = vadd.f32 %v2084_v9, %v449_v51  ;;  %v2169_v17 = vpop.f32.mrf.mxu2  ;;  %v363_v23 = vadd.f32 %v2084_v9, %v362_v49  ;;  %v529_v49 = vmax.f32 %v360_v36, 0.0  ;;  %v528_v51 = vmax.f32 %v357_v43, 0.0 }
  0xe9   :  { %1574 = vmatmul.msk.f32.gmra.mxu0 %vm116_vm0, %v72_v50  ;;  %v559_v41 = vmax.f32 %v450_v11, 0.0  ;;  %v530_v45 = vmax.f32 %v363_v23, 0.0  ;;  %v557_v50 = vmax.f32 %v444_v39, 0.0 }
  0xee   :  { %v365_v53 = vpop.f32.mrf.mxu0  ;;  %v452_v54 = vpop.f32.mrf.mxu1 }
  0xef   :  { %v453_v6 = vadd.f32 %v2084_v9, %v452_v54  ;;  %v366_v13 = vadd.f32 %v2084_v9, %v365_v53  ;;  %v556_v53 = vmax.f32 %v441_v46, 0.0  ;;  %v2190_v54 = vpop.f32.mrf.mxu2  ;;  %v507_v46 = vadd.f32 %v2084_v9, %v2160_v60 }
  0xf0   :  { %v495_v60 = vadd.f32 %v2084_v9, %v2169_v17  ;;  %v483_v17 = vadd.f32 %v2084_v9, %v2143_v40  ;;  %v471_v40 = vadd.f32 %v2084_v9, %v2096_v15  ;;  %v584_v15 = vld [vmem:[%s2590_s2 + $0x10] sm:$0xff] }
  0xf1   :  { %v560_v32 = vmax.f32 %v453_v6, 0.0  ;;  %v531_v38 = vmax.f32 %v366_v13, 0.0  ;;  %v339_v6 = vadd.f32 %v2084_v9, %v2073_v5  ;;  %v523_v13 = vmax.f32 %v342_v22, 0.0 }
  0xf2   :  { %v333_v5 = vadd.f32 %v2084_v9, %v2059_v62  ;;  %v568_v22 = vmax.f32 %v477_v52, 0.0 }
  0xf3   :  { %v522_v7 = vmax.f32 %v339_v6, 0.0 }
  0xf4   :  { %v520_v36 = vmax.f32 %v333_v5, 0.0  ;;  %v585_v5 = vld [vmem:[%s2590_s2 + $0x18] sm:$0xff] }
  0xf6   :  { %v368_v56 = vpop.f32.mrf.mxu0  ;;  %v455_v57 = vpop.f32.mrf.mxu1 }
  0xf7   :  { %v456_v61 = vadd.f32 %v2084_v9, %v455_v57  ;;  %v369_v1 = vadd.f32 %v2084_v9, %v368_v56  ;;  %v527_v56 = vmax.f32 %v354_v44, 0.0  ;;  %v555_v57 = vmax.f32 %v438_v37, 0.0 }
  0xf9   :  { %v561_v16 = vmax.f32 %v456_v61, 0.0  ;;  %v532_v27 = vmax.f32 %v369_v1, 0.0  ;;  %v512_v61 = vpop.f32.mrf.mxu3  ;;  %v554_v1 = vmax.f32 %v435_v31, 0.0  ;;  %v492_v31 = vadd.f32 %v2084_v9, %v2158_v59 }
  0xfa   :  { %v513_v62 = vadd.f32 %v2084_v9, %v512_v61  ;;  %v572_v61 = vmax.f32 %v489_v29, 0.0  ;;  %v480_v59 = vadd.f32 %v2084_v9, %v2134_v33  ;;  %v566_v33 = vmax.f32 %v471_v40, 0.0 }
  0xfe   :  { %v371_v63 = vpop.f32.mrf.mxu0  ;;  %v458_v0 = vpop.f32.mrf.mxu1 }
  0xff   :  { %v372_v3 = vadd.f32 %v2084_v9, %v371_v63  ;;  %v459_v8 = vadd.f32 %v2084_v9, %v458_v0  ;;  %v526_v63 = vmax.f32 %v351_v35, 0.0  ;;  %v429_v0 = vadd.f32 %v2084_v9, %v2091_v12 }
 0x100   :  { %v336_v12 = vadd.f32 %v2084_v9, %v2065_v2  ;;  %v330_v2 = vadd.f32 %v2084_v9, %v2053_v58  ;;  %v510_v58 = vadd.f32 %v2084_v9, %v2173_v34  ;;  %v498_v34 = vadd.f32 %v2084_v9, %v2190_v54 }
 0x101   :  { %v533_v14 = vmax.f32 %v372_v3, 0.0  ;;  %v562_v19 = vmax.f32 %v459_v8, 0.0  ;;  %v553_v3 = vmax.f32 %v432_v28, 0.0  ;;  %v524_v8 = vmax.f32 %v345_v24, 0.0  ;;  %v515_v23 = vpop.f32.mrf.mxu3 }
 0x102   :  { %v552_v11 = vmax.f32 %v429_v0, 0.0  ;;  %v521_v30 = vmax.f32 %v336_v12, 0.0  ;;  %v516_v4 = vadd.f32 %v2084_v9, %v515_v23  ;;  %v486_v54 = vadd.f32 %v2084_v9, %v2150_v48 }
 0x103   :  { %586 = vmatpush.msrb.mxu1 %v533_v14  ;;  %629 = vmatpush.msrb.mxu3 %v562_v19  ;;  %v500_v14 = vpop.f32.mrf.mxu2  ;;  %v551_v19 = vmax.f32 %v426_v18, 0.0  ;;  %v573_v28 = vmax.f32 %v492_v31, 0.0  ;;  %v474_v48 = vadd.f32 %v2084_v9, %v2106_v21  ;;  %v582_v21 = vld [vmem:[%s2590_s2] sm:$0xff] }
 0x104   :  { %v501_v37 = vadd.f32 %v2084_v9, %v500_v14  ;;  %v571_v24 = vmax.f32 %v486_v54, 0.0  ;;  %v828_v54 = vld [vmem:[%s2593_s8] sm:$0xff] }
 0x105   :  { %587 = vmatpush.msrb.mxu1 %v532_v27  ;;  %630 = vmatpush.msrb.mxu3 %v561_v16  ;;  %v550_v27 = vmax.f32 %v423_v10, 0.0 }
 0x106   :  { %v2177_v42 = vpop.f32.mrf.mxu0 }
 0x107   :  { %588 = vmatpush.msrb.mxu1 %v531_v38  ;;  %631 = vmatpush.msrb.mxu3 %v560_v32  ;;  %v327_v32 = vadd.f32 %v2084_v9, %v2047_v55  ;;  %v519_v38 = vmax.f32 %v330_v2, 0.0  ;;  %v580_v55 = vmax.f32 %v513_v62, 0.0 }
 0x109   :  { %589 = vmatpush.msrb.mxu1 %v530_v45  ;;  %632 = vmatpush.msrb.mxu3 %v559_v41  ;;  %v581_v41 = vmax.f32 %v516_v4, 0.0  ;;  %v518_v43 = vmax.f32 %v327_v32, 0.0 }
 0x10b   :  { %590 = vmatpush.msrb.mxu1 %v529_v49  ;;  %633 = vmatpush.msrb.mxu3 %v558_v47  ;;  %v503_v45 = vpop.f32.mrf.mxu2  ;;  %v579_v47 = vmax.f32 %v510_v58, 0.0  ;;  %v578_v49 = vmax.f32 %v507_v46, 0.0 }
 0x10c   :  { %v504_v44 = vadd.f32 %v2084_v9, %v503_v45 }
 0x10d   :  { %591 = vmatpush.msrb.mxu1 %v528_v51  ;;  %634 = vmatpush.msrb.mxu3 %v557_v50  ;;  %v576_v51 = vmax.f32 %v501_v37, 0.0 }
 0x10e   :  { %v2196_v26 = vpop.f32.mrf.mxu0  ;;  %v577_v35 = vmax.f32 %v504_v44, 0.0  ;;  %v375_v44 = vadd.f32 %v2084_v9, %v2177_v42  ;;  %v831_v42 = vld [vmem:[%s2593_s8 + $0x18] sm:$0xff] }
 0x10f   :  { %592 = vmatpush.msrb.mxu1 %v527_v56  ;;  %635 = vmatpush.msrb.mxu3 %v556_v53  ;;  %v575_v53 = vmax.f32 %v498_v34, 0.0  ;;  %v574_v56 = vmax.f32 %v495_v60, 0.0 }
 0x111   :  { %593 = vmatpush.msrb.mxu1 %v526_v63  ;;  %636 = vmatpush.msrb.mxu3 %v555_v57  ;;  %v570_v63 = vmax.f32 %v483_v17, 0.0  ;;  %v2315_v17 = vld [vmem:[%s2595_s9 + $0x8] sm:$0xff] }
 0x113   :  { %594 = vmatpush.msrb.mxu1 %v525_v20  ;;  %637 = vmatpush.msrb.mxu3 %v554_v1  ;;  %v569_v1 = vmax.f32 %v480_v59, 0.0  ;;  %v567_v20 = vmax.f32 %v474_v48, 0.0  ;;  %v1682_v59 = vld [vmem:[%s2591_s6] ss:$0 sm:$0xff]  ;;  %s1759_s6 = smov 64  }
 0x114   :  { %v696_v48 = vld [vmem:[%s2596_s0] sm:$0xff] }
 0x115   :  { %595 = vmatpush.msrb.mxu1 %v524_v8  ;;  %638 = vmatpush.msrb.mxu3 %v553_v3 }
 0x116   :  { %v2212_v16 = vpop.f32.mrf.mxu0 }
 0x117   :  { %596 = vmatpush.msrb.mxu1 %v523_v13  ;;  %639 = vmatpush.msrb.mxu3 %v552_v11  ;;  %v381_v45 = vadd.f32 %v2084_v9, %v2212_v16  ;;  %v583_v16 = vld [vmem:[%s2590_s2 + $0x8] sm:$0xff] }
 0x119   :  { %597 = vmatpush.msrb.mxu1 %v522_v7  ;;  %640 = vmatpush.msrb.mxu3 %v551_v19 }
 0x11b   :  { %598 = vmatpush.msrb.mxu1 %v521_v30  ;;  %641 = vmatpush.msrb.mxu3 %v550_v27 }
 0x11c   :  { %642 = vmatmul.f32.vlgmr.msrb.gmra.mxu3 %v584_v15 }
 0x11d   :  { %599 = vmatpush.msrb.mxu1 %v520_v36 }
 0x11e   :  { %v2222_v39 = vpop.f32.mrf.mxu0 }
 0x11f   :  { %600 = vmatpush.msrb.mxu1 %v519_v38 }
 0x121   :  { %601 = vmatpush.msrb.mxu1 %v518_v43 }
 0x122   :  { %602 = vmatmul.f32.vlgmr.msrb.gmra.mxu1 %v582_v21  ;;  %v758_v21 = vld [vmem:[%s2597_s7 + $0x20] sm:$0xff] }
 0x123   :  { %646 = vmatpush.msra.mxu1 %v581_v41  ;;  %v384_v41 = vadd.f32 %v2084_v9, %v2222_v39  ;;  %v534_v39 = vmax.f32 %v375_v44, 0.0 }
 0x125   :  { %647 = vmatpush.msra.mxu1 %v580_v55  ;;  %v378_v55 = vadd.f32 %v2084_v9, %v2196_v26  ;;  %v667_v26 = vld [vmem:[%s2592_s5 + $0x8] sm:$0xff] }
 0x126   :  { %v2230_v50 = vpop.f32.mrf.mxu0 }
 0x127   :  { %648 = vmatpush.msra.mxu1 %v579_v47  ;;  %v387_v38 = vadd.f32 %v2084_v9, %v2230_v50  ;;  %v537_v47 = vmax.f32 %v384_v41, 0.0  ;;  %v535_v37 = vmax.f32 %v378_v55, 0.0  ;;  %v830_v50 = vld [vmem:[%s2593_s8 + $0x10] sm:$0xff] }
 0x129   :  { %649 = vmatpush.msra.mxu1 %v578_v49  ;;  %v538_v46 = vmax.f32 %v387_v38, 0.0  ;;  %v536_v49 = vmax.f32 %v381_v45, 0.0 }
 0x12b   :  { %650 = vmatpush.msra.mxu1 %v577_v35 }
 0x12d   :  { %651 = vmatpush.msra.mxu1 %v576_v51 }
 0x12e   :  { %v389_v57 = vpop.f32.mrf.mxu0 }
 0x12f   :  { %652 = vmatpush.msra.mxu1 %v575_v53  ;;  %v390_v36 = vadd.f32 %v2084_v9, %v389_v57  ;;  %v2308_v57 = vld [vmem:[%s2595_s9 + $0x10] sm:$0xff] }
 0x131   :  { %653 = vmatpush.msra.mxu1 %v574_v56  ;;  %v539_v43 = vmax.f32 %v390_v36, 0.0  ;;  %v829_v56 = vld [vmem:[%s2593_s8 + $0x8] sm:$0xff] }
 0x133   :  { %654 = vmatpush.msra.mxu1 %v573_v28  ;;  %v2303_v28 = vld [vmem:[%s2595_s9 + $0x18] sm:$0xff] }
 0x135   :  { %655 = vmatpush.msra.mxu1 %v572_v61  ;;  %v2322_v61 = vld [vmem:[%s2595_s9] sm:$0xff] }
 0x136   :  { %v392_v0 = vpop.f32.mrf.mxu0 }
 0x137   :  { %656 = vmatpush.msra.mxu1 %v571_v24  ;;  %v393_v4 = vadd.f32 %v2084_v9, %v392_v0  ;;  %v1757_v24 = vmov 0.0   ;;  %v1758_v0 = vmov 0  }
 0x138   :  { %1678 = vset.pattern.permute.xlu0 %v1758_v0  ;;  %1679 = vset.pattern.permute.xlu2 %v1758_v0 }
 0x139   :  { %657 = vmatpush.msra.mxu1 %v570_v63  ;;  %v540_v58 = vmax.f32 %v393_v4, 0.0  ;;  %707 = vperm.xlu0 %1678, %v696_v48  }
 0x13a   :  { %1680 = vset.pattern.permute.xlu1 %v1758_v0 }
 0x13b   :  { %658 = vmatpush.msra.mxu1 %v569_v1  ;;  %v2347_v1 = vld [vmem:[%s2594_s10] ss:$0 sm:$0xff] }
 0x13d   :  { %659 = vmatpush.msra.mxu1 %v568_v22 }
 0x13e   :  { %v395_v3 = vpop.f32.mrf.mxu0 }
 0x13f   :  { %660 = vmatpush.msra.mxu1 %v567_v20  ;;  %v396_v27 = vadd.f32 %v2084_v9, %v395_v3 }
 0x141   :  { %661 = vmatpush.msra.mxu1 %v566_v33  ;;  %v541_v62 = vmax.f32 %v396_v27, 0.0 }
 0x142   :  { %662 = vmatmul.f32.vlgmr.msra.gmra.mxu1 %v585_v5  ;;  %v754_v5 = vld [vmem:[%s2597_s7] sm:$0xff] }
 0x143   :  { %926 = vmatpush.msrb.mxu1 %v2303_v28 }
 0x145   :  { %927 = vmatpush.msrb.mxu1 %v2308_v57 }
 0x146   :  { %v398_v6 = vpop.f32.mrf.mxu0 }
 0x147   :  { %v399_v23 = vadd.f32 %v2084_v9, %v398_v6  ;;  %928 = vmatpush.msrb.mxu1 %v2315_v17  ;;  %v761_v6 = vld [vmem:[%s2597_s7 + $0x38] sm:$0xff] }
 0x148   :  { %795 = vmatpush.msra.mxu3 %v761_v6 }
 0x149   :  { %v542_v32 = vmax.f32 %v399_v23, 0.0  ;;  %929 = vmatpush.msrb.mxu1 %v2322_v61 }
 0x14a   :  { %930 = vmatmul.f32.vlgmr.msrb.gmra.mxu1 %v1757_v24 }
 0x14b   :  { %989 = vmatpush.msra.mxu1 %v2303_v28 }
 0x14d   :  { %990 = vmatpush.msra.mxu1 %v2308_v57 }
 0x14e   :  { %v401_v25 = vpop.f32.mrf.mxu0 }
 0x14f   :  { %v402_v19 = vadd.f32 %v2084_v9, %v401_v25  ;;  %991 = vmatpush.msra.mxu1 %v2315_v17  ;;  %v760_v25 = vld [vmem:[%s2597_s7 + $0x30] sm:$0xff] }
 0x150   :  { %796 = vmatpush.msra.mxu3 %v760_v25 }
 0x151   :  { %v543_v30 = vmax.f32 %v402_v19, 0.0  ;;  %992 = vmatpush.msra.mxu1 %v2322_v61 }
 0x153   :  { %1052 = vmatpush.msrb.mxu1 %v2303_v28 }
 0x155   :  { %1053 = vmatpush.msrb.mxu1 %v2308_v57 }
 0x156   :  { %v404_v8 = vpop.f32.mrf.mxu0 }
 0x157   :  { %v405_v10 = vadd.f32 %v2084_v9, %v404_v8  ;;  %1054 = vmatpush.msrb.mxu1 %v2315_v17  ;;  %v759_v8 = vld [vmem:[%s2597_s7 + $0x28] sm:$0xff] }
 0x158   :  { %797 = vmatpush.msra.mxu3 %v759_v8 }
 0x159   :  { %v544_v2 = vmax.f32 %v405_v10, 0.0  ;;  %1055 = vmatpush.msrb.mxu1 %v2322_v61  ;;  %v755_v10 = vld [vmem:[%s2597_s7 + $0x8] sm:$0xff] }
 0x15a   :  { %798 = vmatpush.msra.mxu3 %v758_v21 }
 0x15e   :  { %v407_v18 = vpop.f32.mrf.mxu0 }
 0x15f   :  { %v408_v12 = vadd.f32 %v2084_v9, %v407_v18  ;;  %v704_v18 = vlaneseq }
 0x161   :  { %v545_v7 = vmax.f32 %v408_v12, 0.0  ;;  %v2366_v12 = vand.u32 127, %v704_v18 }
 0x166   :  { %v410_v11 = vpop.f32.mrf.mxu0 }
 0x167   :  { %v411_v13 = vadd.f32 %v2084_v9, %v410_v11  ;;  %v666_v9 = vld [vmem:[%s2592_s5] sm:$0xff]  ;;  %v757_v11 = vld [vmem:[%s2597_s7 + $0x18] sm:$0xff] }
 0x168   :  { %799 = vmatpush.msra.mxu3 %v757_v11 }
 0x169   :  { %v546_v14 = vmax.f32 %v411_v13, 0.0  ;;  %v756_v13 = vld [vmem:[%s2597_s7 + $0x10] sm:$0xff]  ;;  %s1760_s7 = smov 32  }
 0x16a   :  { %800 = vmatpush.msra.mxu3 %v756_v13 }
 0x16b   :  { %609 = vmatpush.msrb.mxu2 %v546_v14 }
 0x16c   :  { %801 = vmatpush.msra.mxu3 %v755_v10 }
 0x16d   :  { %610 = vmatpush.msrb.mxu2 %v545_v7 }
 0x16e   :  { %802 = vmatpush.msra.mxu3 %v754_v5 }
 0x16f   :  { %611 = vmatpush.msrb.mxu2 %v544_v2 }
 0x170   :  { %1304 = vmatpush.msrb.mxu3 %v2303_v28 }
 0x171   :  { %612 = vmatpush.msrb.mxu2 %v543_v30 }
 0x172   :  { %1305 = vmatpush.msrb.mxu3 %v2308_v57 }
 0x173   :  { %613 = vmatpush.msrb.mxu2 %v542_v32 }
 0x174   :  { %1306 = vmatpush.msrb.mxu3 %v2315_v17 }
 0x175   :  { %614 = vmatpush.msrb.mxu2 %v541_v62 }
 0x176   :  { %1307 = vmatpush.msrb.mxu3 %v2322_v61 }
 0x177   :  { %615 = vmatpush.msrb.mxu2 %v540_v58 }
 0x179   :  { %616 = vmatpush.msrb.mxu2 %v539_v43 }
 0x17b   :  { %617 = vmatpush.msrb.mxu2 %v538_v46 }
 0x17d   :  { %618 = vmatpush.msrb.mxu2 %v537_v47 }
 0x17f   :  { %619 = vmatpush.msrb.mxu2 %v536_v49 }
 0x181   :  { %620 = vmatpush.msrb.mxu2 %v535_v37 }
 0x183   :  { %621 = vmatpush.msrb.mxu2 %v534_v39 }
 0x184   :  { %622 = vmatmul.f32.vlgmr.msrb.gmra.mxu2 %v583_v16 }
 0x185   :  { %690 = vmatpush.msra.mxu2 %v667_v26 }
 0x187   :  { %691 = vmatpush.msra.mxu2 %v666_v9 }
 0x189   :  { %875 = vmatpush.msrb.mxu2 %v831_v42 }
 0x18b   :  { %876 = vmatpush.msrb.mxu2 %v830_v50 }
 0x18d   :  { %877 = vmatpush.msrb.mxu2 %v829_v56 }
 0x18f   :  { %878 = vmatpush.msrb.mxu2 %v828_v54 }
 0x19f   :  { %v603_v34 = vpop.f32.mrf.mxu1  ;;  %v643_v60 = vpop.f32.mrf.mxu3 }
 0x1ab   :  { %v708_v14 = vpop.permute.xlu0 %707 }
 0x1ac   :  { %vm730_vm2 = vcmp.eq.s32.totalorder %v2366_v12, %v708_v14 }
 0x1ad   :  { %v1611_v19 = vsel %vm730_vm2, 1.0, %v1757_v24 }
 0x1ae   :  { %1619 = vmatmul.msk.f32.vlgmr.msra.gmra.mxu3 %vm762_vm3, %v1611_v19 }
 0x1bf   :  { %v663_v31 = vpop.f32.mrf.mxu1 }
 0x1c7   :  { %v931_v22 = vpop.f32.mrf.mxu1 }
 0x207   :  { %v623_v35 = vpop.f32.mrf.mxu2 }
 0x208   :  { %v624_v51 = vadd.f32 %v623_v35, %v603_v34 }
 0x20a   :  { %v644_v53 = vadd.f32 %v643_v60, %v624_v51 }
 0x20c   :  { %v664_v29 = vadd.f32 %v663_v31, %v644_v53  ;;  %v697_v31 = vld [vmem:[%s2596_s0 + $0x8] sm:$0xff] }
 0x20e   :  { %1610 = vmatmul.msk.f32.vlgmr.msra.gmra.mxu2 %vm672_vm1, %v664_v29 }
 0x20f   :  { %1430 = vmatpush.msra.mxu2 %v2303_v28 }
 0x211   :  { %1431 = vmatpush.msra.mxu2 %v2308_v57 }
 0x213   :  { %1432 = vmatpush.msra.mxu2 %v2315_v17 }
 0x215   :  { %1433 = vmatpush.msra.mxu2 %v2322_v61 }
 0x231   :  { %v804_v46 = vpop.f32.mrf.mxu3 }
 0x291   :  { %v693_v63 = vpop.f32.mrf.mxu2 }
 0x292   :  { %v694_v52 = vadd.f32 %v1682_v59, %v693_v63 }
 0x294   :  { %1627 = vmatmul.msk.f32.vlgmr.msrb.gmra.mxu2 %vm116_vm0, %v694_v52 }
 0x29c   :  { %1628 = vmatmul.msk.f32.gmra.mxu2 %vm116_vm0, %v804_v46 }
 0x317   :  { %v880_v40 = vpop.f32.mrf.mxu2 }
 0x318   :  { %v881_v20 = vadd.f32 %v2347_v1, %v880_v40 }
 0x31a   :  { %v934_v33 = vadd.f32 %v931_v22, %v881_v20 }
 0x31c   :  { %1685 = vtanh.f32 %v934_v33  ;;  %v1636_v15 = vmul.f32 -1.442695, %v934_v33 }
 0x31e   :  { %1687 = vpow2.f32 %v1636_v15 }
 0x31f   :  { %v883_v26 = vpop.f32.mrf.mxu2 }
 0x320   :  { %v884_v9 = vadd.f32 %v2347_v1, %v883_v26 }
 0x322   :  { %v1686_v3 = vpop.eup %1685 }
 0x323   :  { %957 = vrot.lane.b32.xlu0 %v1686_v3, %s1759_s6 }
 0x324   :  { %v1688_v7 = vpop.eup %1687 }
 0x325   :  { %v938_v23 = vadd.f32 1.0, %v1688_v7 }
 0x327   :  { %1689 = vrcp.f32 %v938_v23  ;;  %v950_v36 = vand.u32 2147483648, %v938_v23  ;;  %vm944_vm5 = vweird.f32 %v938_v23  ;;  %v948_v62 = vand.u32 2147483647, %v938_v23 }
 0x329   :  { %v951_v58 = vor.u32 1.1754944e-38, %v950_v36  ;;  %vm949_vm7 = vcmp.eq.f32.partialorder %v948_v62, 8.507059e+37 }
 0x32d   :  { %v1690_v2 = vpop.eup %1689 }
 0x32e   :  { %v940_v27 = vmul.f32 %v1690_v2, %v938_v23  ;;  %vm945_vm4 = vweird.f32 %v1690_v2 }
 0x32f   :  { %vm946_vm6 = vmor %vm944_vm5, %vm945_vm4 }
 0x330   :  { %v941_v30 = vsub.f32 1.0, %v940_v27 }
 0x332   :  { %v942_v4 = vmul.f32 %v1690_v2, %v941_v30  ;;  %v698_v30 = vld [vmem:[%s2596_s0 + $0x10] sm:$0xff] }
 0x334   :  { %v943_v32 = vadd.f32 %v1690_v2, %v942_v4 }
 0x336   :  { %v947_v38 = vsel %vm946_vm6, %v1690_v2, %v943_v32 }
 0x337   :  { %v952_v41 = vsel %vm949_vm7, %v951_v58, %v947_v38 }
 0x338   :  { %v955_v55 = vmul.f32 0.0, %v952_v41 }
 0x395   :  { %v958_v43 = vpop.permute.xlu0 %957 }
 0x396   :  { %v960_v45 = vmul.f32 %v958_v43, %v952_v41 }
 0x398   :  { %962 = vrot.lane.b32.xlu1 %v960_v45, %s1760_s7 }
 0x40a   :  { %v963_v47 = vpop.permute.xlu1 %962 }
 0x40b   :  { %v965_v44 = vadd.f32 %v963_v47, %v955_v55 }
 0x40d   :  { %1691 = vtanh.f32 %v965_v44 }
 0x413   :  { %v1692_v49 = vpop.eup %1691 }
 0x414   :  { %968 = vrot.lane.b32.xlu1 %v1692_v49, %s1759_s6 }
 0x486   :  { %v969_v37 = vpop.permute.xlu1 %968 }
 0x487   :  { %v971_v39 = vmul.f32 %v969_v37, %v952_v41 }
 0x489   :  { %973 = vrot.lane.b32.xlu2 %v971_v39, %s1760_s7 }
 0x491   :  { %710 = vperm.xlu2 %1679, %v697_v31  }
 0x4e3   :  { %v2388_v16 = vpop.permute.xlu2 %973 }
 0x4e4   :  { %1637 = vmatmul.msk.f32.vlgmr.msra.gmra.mxu1 %vm116_vm0, %v2388_v16 }
 0x4e5   :  { %1115 = vmatpush.msra.mxu1 %v2303_v28 }
 0x4e7   :  { %1116 = vmatpush.msra.mxu1 %v2308_v57 }
 0x4e9   :  { %1117 = vmatpush.msra.mxu1 %v2315_v17 }
 0x4eb   :  { %1118 = vmatpush.msra.mxu1 %v2322_v61  ;;  %v711_v33 = vpop.permute.xlu2 %710 }
 0x4ec   :  { %vm731_vm12 = vcmp.eq.s32.totalorder %v2366_v12, %v711_v33 }
 0x4ed   :  { %v1612_v3 = vsel %vm731_vm12, 1.0, %v1757_v24 }
 0x4ee   :  { %1620 = vmatmul.msk.f32.gmra.mxu3 %vm762_vm3, %v1612_v3 }
 0x561   :  { %v994_v42 = vpop.f32.mrf.mxu1 }
 0x562   :  { %v997_v50 = vadd.f32 %v994_v42, %v884_v9 }
 0x564   :  { %1693 = vtanh.f32 %v997_v50  ;;  %v1638_v35 = vmul.f32 -1.442695, %v997_v50 }
 0x566   :  { %1695 = vpow2.f32 %v1638_v35 }
 0x56a   :  { %v1694_v34 = vpop.eup %1693 }
 0x56b   :  { %1020 = vrot.lane.b32.xlu0 %v1694_v34, %s1759_s6 }
 0x56c   :  { %v1696_v60 = vpop.eup %1695 }
 0x56d   :  { %v1001_v51 = vadd.f32 1.0, %v1696_v60 }
 0x56f   :  { %1697 = vrcp.f32 %v1001_v51  ;;  %v1013_v63 = vand.u32 2147483648, %v1001_v51  ;;  %vm1007_vm9 = vweird.f32 %v1001_v51  ;;  %v1011_v52 = vand.u32 2147483647, %v1001_v51 }
 0x571   :  { %v1014_v48 = vor.u32 1.1754944e-38, %v1013_v63  ;;  %vm1012_vm11 = vcmp.eq.f32.partialorder %v1011_v52, 8.507059e+37  ;;  %v807_v11 = vpop.f32.mrf.mxu3 }
 0x572   :  { %1629 = vmatmul.msk.f32.gmra.mxu2 %vm116_vm0, %v807_v11 }
 0x575   :  { %v1698_v53 = vpop.eup %1697 }
 0x576   :  { %v1003_v29 = vmul.f32 %v1698_v53, %v1001_v51  ;;  %vm1008_vm8 = vweird.f32 %v1698_v53 }
 0x577   :  { %vm1009_vm10 = vmor %vm1007_vm9, %vm1008_vm8 }
 0x578   :  { %v1004_v56 = vsub.f32 1.0, %v1003_v29 }
 0x57a   :  { %v1005_v54 = vmul.f32 %v1698_v53, %v1004_v56 }
 0x57c   :  { %v1006_v59 = vadd.f32 %v1698_v53, %v1005_v54 }
 0x57e   :  { %v1010_v0 = vsel %vm1009_vm10, %v1698_v53, %v1006_v59 }
 0x57f   :  { %v1015_v22 = vsel %vm1012_vm11, %v1014_v48, %v1010_v0 }
 0x580   :  { %v1018_v6 = vmul.f32 %v1015_v22, %v965_v44  ;;  %v699_v44 = vld [vmem:[%s2596_s0 + $0x18] sm:$0xff] }
 0x5dd   :  { %v1021_v40 = vpop.permute.xlu0 %1020 }
 0x5de   :  { %v1023_v20 = vmul.f32 %v1021_v40, %v1015_v22 }
 0x5e0   :  { %1025 = vrot.lane.b32.xlu1 %v1023_v20, %s1760_s7 }
 0x5e8   :  { %713 = vperm.xlu1 %1680, %v698_v30  }
 0x5f5   :  { %v886_v10 = vpop.f32.mrf.mxu2 }
 0x5f6   :  { %v887_v14 = vadd.f32 %v2347_v1, %v886_v10  ;;  %v700_v10 = vld [vmem:[%s2596_s0 + $0x20] sm:$0xff] }
 0x652   :  { %v1026_v25 = vpop.permute.xlu1 %1025 }
 0x653   :  { %v1028_v8 = vadd.f32 %v1026_v25, %v1018_v6 }
 0x655   :  { %1699 = vtanh.f32 %v1028_v8 }
 0x65a   :  { %v714_v49 = vpop.permute.xlu1 %713 }
 0x65b   :  { %v1700_v18 = vpop.eup %1699  ;;  %vm732_vm2 = vcmp.eq.s32.totalorder %v2366_v12, %v714_v49 }
 0x65c   :  { %1031 = vrot.lane.b32.xlu2 %v1700_v18, %s1759_s6  ;;  %v1613_v37 = vsel %vm732_vm2, 1.0, %v1757_v24 }
 0x65d   :  { %1621 = vmatmul.msk.f32.gmra.mxu3 %vm762_vm3, %v1613_v37 }
 0x6b6   :  { %v1032_v21 = vpop.permute.xlu2 %1031 }
 0x6b7   :  { %v1034_v15 = vmul.f32 %v1032_v21, %v1015_v22 }
 0x6b9   :  { %1036 = vrot.lane.b32.xlu0 %v1034_v15, %s1760_s7 }
 0x6e0   :  { %v810_v35 = vpop.f32.mrf.mxu3 }
 0x6e1   :  { %1630 = vmatmul.msk.f32.gmra.mxu2 %vm116_vm0, %v810_v35 }
 0x72b   :  { %v2408_v13 = vpop.permute.xlu0 %1036 }
 0x72c   :  { %1639 = vmatmul.msk.f32.vlgmr.msrb.gmra.mxu1 %vm116_vm0, %v2408_v13 }
 0x72d   :  { %1178 = vmatpush.msrb.mxu1 %v2303_v28 }
 0x72f   :  { %1179 = vmatpush.msrb.mxu1 %v2308_v57 }
 0x731   :  { %1180 = vmatpush.msrb.mxu1 %v2315_v17 }
 0x733   :  { %1181 = vmatpush.msrb.mxu1 %v2322_v61 }
 0x764   :  { %v889_v29 = vpop.f32.mrf.mxu2 }
 0x765   :  { %v890_v56 = vadd.f32 %v2347_v1, %v889_v29 }
 0x7a9   :  { %v1057_v5 = vpop.f32.mrf.mxu1 }
 0x7aa   :  { %v1060_v19 = vadd.f32 %v1057_v5, %v887_v14 }
 0x7ac   :  { %1701 = vtanh.f32 %v1060_v19  ;;  %v1640_v23 = vmul.f32 -1.442695, %v1060_v19 }
 0x7ae   :  { %1703 = vpow2.f32 %v1640_v23 }
 0x7b2   :  { %v1702_v7 = vpop.eup %1701 }
 0x7b3   :  { %1083 = vrot.lane.b32.xlu2 %v1702_v7, %s1759_s6 }
 0x7b4   :  { %v1704_v2 = vpop.eup %1703 }
 0x7b5   :  { %v1064_v27 = vadd.f32 1.0, %v1704_v2 }
 0x7b7   :  { %1705 = vrcp.f32 %v1064_v27  ;;  %v1076_v58 = vand.u32 2147483648, %v1064_v27  ;;  %vm1070_vm14 = vweird.f32 %v1064_v27  ;;  %v1074_v41 = vand.u32 2147483647, %v1064_v27 }
 0x7b9   :  { %v1077_v45 = vor.u32 1.1754944e-38, %v1076_v58  ;;  %vm1075_vm1 = vcmp.eq.f32.partialorder %v1074_v41, 8.507059e+37 }
 0x7bd   :  { %v1706_v4 = vpop.eup %1705 }
 0x7be   :  { %v1066_v32 = vmul.f32 %v1706_v4, %v1064_v27  ;;  %vm1071_vm13 = vweird.f32 %v1706_v4 }
 0x7bf   :  { %vm1072_vm15 = vmor %vm1070_vm14, %vm1071_vm13 }
 0x7c0   :  { %v1067_v36 = vsub.f32 1.0, %v1066_v32 }
 0x7c2   :  { %v1068_v62 = vmul.f32 %v1706_v4, %v1067_v36 }
 0x7c4   :  { %v1069_v38 = vadd.f32 %v1706_v4, %v1068_v62 }
 0x7c6   :  { %v1073_v43 = vsel %vm1072_vm15, %v1706_v4, %v1069_v38 }
 0x7c7   :  { %v1078_v55 = vsel %vm1075_vm1, %v1077_v45, %v1073_v43 }
 0x7c8   :  { %v1081_v39 = vmul.f32 %v1078_v55, %v1028_v8 }
 0x80d   :  { %v1084_v46 = vpop.permute.xlu2 %1083 }
 0x80e   :  { %v1086_v47 = vmul.f32 %v1084_v46, %v1078_v55 }
 0x810   :  { %1088 = vrot.lane.b32.xlu0 %v1086_v47, %s1760_s7 }
 0x818   :  { %716 = vperm.xlu0 %1678, %v699_v44  }
 0x882   :  { %v1089_v26 = vpop.permute.xlu0 %1088 }
 0x883   :  { %v1091_v9 = vadd.f32 %v1089_v26, %v1081_v39 }
 0x885   :  { %1707 = vtanh.f32 %v1091_v9 }
 0x88a   :  { %v717_v42 = vpop.permute.xlu0 %716 }
 0x88b   :  { %v1708_v50 = vpop.eup %1707  ;;  %vm733_vm4 = vcmp.eq.s32.totalorder %v2366_v12, %v717_v42  ;;  %v701_v42 = vld [vmem:[%s2596_s0 + $0x28] sm:$0xff] }
 0x88c   :  { %v1614_v34 = vsel %vm733_vm4, 1.0, %v1757_v24  ;;  %1094 = vrot.lane.b32.xlu1 %v1708_v50, %s1759_s6 }
 0x88d   :  { %1622 = vmatmul.msk.f32.gmra.mxu3 %vm762_vm3, %v1614_v34 }
 0x8fe   :  { %v1095_v60 = vpop.permute.xlu1 %1094 }
 0x8ff   :  { %v1097_v51 = vmul.f32 %v1095_v60, %v1078_v55 }
 0x901   :  { %1099 = vrot.lane.b32.xlu2 %v1097_v51, %s1760_s7 }
 0x910   :  { %v813_v31 = vpop.f32.mrf.mxu3 }
 0x911   :  { %1631 = vmatmul.msk.f32.gmra.mxu2 %vm116_vm0, %v813_v31 }
 0x95b   :  { %v2435_v53 = vpop.permute.xlu2 %1099 }
 0x95c   :  { %1641 = vmatmul.msk.f32.vlgmr.msra.gmra.mxu1 %vm116_vm0, %v2435_v53 }
 0x95d   :  { %1241 = vmatpush.msra.mxu1 %v2303_v28 }
 0x95f   :  { %1242 = vmatpush.msra.mxu1 %v2308_v57 }
 0x961   :  { %1243 = vmatpush.msra.mxu1 %v2315_v17 }
 0x963   :  { %1244 = vmatpush.msra.mxu1 %v2322_v61 }
 0x994   :  { %v892_v36 = vpop.f32.mrf.mxu2 }
 0x995   :  { %v893_v62 = vadd.f32 %v2347_v1, %v892_v36 }
 0x9d9   :  { %v1120_v54 = vpop.f32.mrf.mxu1 }
 0x9da   :  { %v1123_v59 = vadd.f32 %v1120_v54, %v890_v56 }
 0x9dc   :  { %1709 = vtanh.f32 %v1123_v59  ;;  %v1642_v52 = vmul.f32 -1.442695, %v1123_v59 }
 0x9de   :  { %1711 = vpow2.f32 %v1642_v52 }
 0x9e2   :  { %v1710_v63 = vpop.eup %1709 }
 0x9e3   :  { %1146 = vrot.lane.b32.xlu1 %v1710_v63, %s1759_s6 }
 0x9e4   :  { %v1712_v0 = vpop.eup %1711 }
 0x9e5   :  { %v1127_v48 = vadd.f32 1.0, %v1712_v0 }
 0x9e7   :  { %1713 = vrcp.f32 %v1127_v48  ;;  %v1139_v6 = vand.u32 2147483648, %v1127_v48  ;;  %vm1133_vm6 = vweird.f32 %v1127_v48  ;;  %v1137_v25 = vand.u32 2147483647, %v1127_v48 }
 0x9e9   :  { %v1140_v18 = vor.u32 1.1754944e-38, %v1139_v6  ;;  %vm1138_vm8 = vcmp.eq.f32.partialorder %v1137_v25, 8.507059e+37 }
 0x9ed   :  { %v1714_v40 = vpop.eup %1713 }
 0x9ee   :  { %v1129_v22 = vmul.f32 %v1714_v40, %v1127_v48  ;;  %vm1134_vm5 = vweird.f32 %v1714_v40 }
 0x9ef   :  { %vm1135_vm7 = vmor %vm1133_vm6, %vm1134_vm5 }
 0x9f0   :  { %v1130_v20 = vsub.f32 1.0, %v1129_v22  ;;  %v702_v22 = vld [vmem:[%s2596_s0 + $0x30] sm:$0xff] }
 0x9f2   :  { %v1131_v33 = vmul.f32 %v1714_v40, %v1130_v20 }
 0x9f4   :  { %v1132_v3 = vadd.f32 %v1714_v40, %v1131_v33 }
 0x9f6   :  { %v1136_v8 = vsel %vm1135_vm7, %v1714_v40, %v1132_v3 }
 0x9f7   :  { %v1141_v15 = vsel %vm1138_vm8, %v1140_v18, %v1136_v8 }
 0x9f8   :  { %v1144_v14 = vmul.f32 %v1141_v15, %v1091_v9 }
 0xa55   :  { %v1147_v21 = vpop.permute.xlu1 %1146 }
 0xa56   :  { %v1149_v11 = vmul.f32 %v1147_v21, %v1141_v15 }
 0xa58   :  { %1151 = vrot.lane.b32.xlu2 %v1149_v11, %s1760_s7 }
 0xa60   :  { %719 = vperm.xlu2 %1679, %v700_v10  }
 0xab2   :  { %v1152_v5 = vpop.permute.xlu2 %1151 }
 0xab3   :  { %v1154_v19 = vadd.f32 %v1152_v5, %v1144_v14 }
 0xab5   :  { %1715 = vtanh.f32 %v1154_v19 }
 0xaba   :  { %v720_v7 = vpop.permute.xlu2 %719 }
 0xabb   :  { %v1716_v23 = vpop.eup %1715  ;;  %vm734_vm9 = vcmp.eq.s32.totalorder %v2366_v12, %v720_v7 }
 0xabc   :  { %v1615_v2 = vsel %vm734_vm9, 1.0, %v1757_v24  ;;  %1157 = vrot.lane.b32.xlu0 %v1716_v23, %s1759_s6 }
 0xabd   :  { %1623 = vmatmul.msk.f32.gmra.mxu3 %vm762_vm3, %v1615_v2  ;;  %v703_v2 = vld [vmem:[%s2596_s0 + $0x38] sm:$0xff] }
 0xb2e   :  { %v1158_v27 = vpop.permute.xlu0 %1157 }
 0xb2f   :  { %v1160_v30 = vmul.f32 %v1158_v27, %v1141_v15 }
 0xb31   :  { %1162 = vrot.lane.b32.xlu1 %v1160_v30, %s1760_s7 }
 0xb40   :  { %v816_v4 = vpop.f32.mrf.mxu3 }
 0xb41   :  { %1632 = vmatmul.msk.f32.gmra.mxu2 %vm116_vm0, %v816_v4 }
 0xba3   :  { %v2455_v32 = vpop.permute.xlu1 %1162 }
 0xba4   :  { %1643 = vmatmul.msk.f32.vlgmr.msrb.gmra.mxu1 %vm116_vm0, %v2455_v32 }
 0xba5   :  { %1367 = vmatpush.msrb.mxu1 %v2303_v28 }
 0xba7   :  { %1368 = vmatpush.msrb.mxu1 %v2308_v57 }
 0xba9   :  { %1369 = vmatpush.msrb.mxu1 %v2315_v17 }
 0xbab   :  { %1370 = vmatpush.msrb.mxu1 %v2322_v61 }
 0xbc4   :  { %v895_v63 = vpop.f32.mrf.mxu2 }
 0xbc5   :  { %v896_v52 = vadd.f32 %v2347_v1, %v895_v63 }
 0xc21   :  { %v1183_v38 = vpop.f32.mrf.mxu1 }
 0xc22   :  { %v1186_v58 = vadd.f32 %v1183_v38, %v893_v62 }
 0xc24   :  { %1717 = vtanh.f32 %v1186_v58  ;;  %v1644_v43 = vmul.f32 -1.442695, %v1186_v58 }
 0xc26   :  { %1719 = vpow2.f32 %v1644_v43 }
 0xc2a   :  { %v1718_v41 = vpop.eup %1717 }
 0xc2b   :  { %1209 = vrot.lane.b32.xlu0 %v1718_v41, %s1759_s6 }
 0xc2c   :  { %v1720_v45 = vpop.eup %1719 }
 0xc2d   :  { %v1190_v46 = vadd.f32 1.0, %v1720_v45 }
 0xc2f   :  { %1721 = vrcp.f32 %v1190_v46  ;;  %v1202_v61 = vand.u32 2147483648, %v1190_v46  ;;  %vm1196_vm11 = vweird.f32 %v1190_v46  ;;  %v1200_v44 = vand.u32 2147483647, %v1190_v46 }
 0xc31   :  { %v1203_v37 = vor.u32 1.1754944e-38, %v1202_v61  ;;  %vm1201_vm13 = vcmp.eq.f32.partialorder %v1200_v44, 8.507059e+37 }
 0xc35   :  { %v1722_v28 = vpop.eup %1721 }
 0xc36   :  { %v1192_v57 = vmul.f32 %v1722_v28, %v1190_v46  ;;  %vm1197_vm10 = vweird.f32 %v1722_v28 }
 0xc37   :  { %vm1198_vm12 = vmor %vm1196_vm11, %vm1197_vm10 }
 0xc38   :  { %v1193_v55 = vsub.f32 1.0, %v1192_v57  ;;  %v1476_v57 = vld [vmem:[%s2598_s11] sm:$0xff] }
 0xc3a   :  { %v1194_v17 = vmul.f32 %v1722_v28, %v1193_v55 }
 0xc3c   :  { %v1195_v47 = vadd.f32 %v1722_v28, %v1194_v17 }
 0xc3e   :  { %v1199_v49 = vsel %vm1198_vm12, %v1722_v28, %v1195_v47  ;;  %v1477_v28 = vld [vmem:[%s2598_s11 + $0x8] sm:$0xff] }
 0xc3f   :  { %v1204_v26 = vsel %vm1201_vm13, %v1203_v37, %v1199_v49 }
 0xc40   :  { %v1207_v50 = vmul.f32 %v1204_v26, %v1154_v19 }
 0xc9d   :  { %v1210_v39 = vpop.permute.xlu0 %1209 }
 0xc9e   :  { %v1212_v9 = vmul.f32 %v1210_v39, %v1204_v26 }
 0xca0   :  { %1214 = vrot.lane.b32.xlu1 %v1212_v9, %s1760_s7 }
 0xca8   :  { %722 = vperm.xlu1 %1680, %v701_v42  }
 0xd12   :  { %v1215_v34 = vpop.permute.xlu1 %1214 }
 0xd13   :  { %v1217_v35 = vadd.f32 %v1215_v34, %v1207_v50 }
 0xd15   :  { %1723 = vtanh.f32 %v1217_v35 }
 0xd1a   :  { %v723_v60 = vpop.permute.xlu1 %722 }
 0xd1b   :  { %v1724_v51 = vpop.eup %1723  ;;  %vm735_vm14 = vcmp.eq.s32.totalorder %v2366_v12, %v723_v60 }
 0xd1c   :  { %v1616_v31 = vsel %vm735_vm14, 1.0, %v1757_v24  ;;  %1220 = vrot.lane.b32.xlu2 %v1724_v51, %s1759_s6 }
 0xd1d   :  { %1624 = vmatmul.msk.f32.gmra.mxu3 %vm762_vm3, %v1616_v31 }
 0xd76   :  { %v1221_v29 = vpop.permute.xlu2 %1220 }
 0xd77   :  { %v1223_v56 = vmul.f32 %v1221_v29, %v1204_v26 }
 0xd79   :  { %1225 = vrot.lane.b32.xlu0 %v1223_v56, %s1760_s7 }
 0xda0   :  { %v819_v54 = vpop.f32.mrf.mxu3 }
 0xda1   :  { %1633 = vmatmul.msk.f32.gmra.mxu2 %vm116_vm0, %v819_v54 }
 0xdeb   :  { %v2475_v59 = vpop.permute.xlu0 %1225 }
 0xdec   :  { %1645 = vmatmul.msk.f32.vlgmr.msra.gmra.mxu1 %vm116_vm0, %v2475_v59 }
 0xe24   :  { %v898_v17 = vpop.f32.mrf.mxu2 }
 0xe25   :  { %v899_v47 = vadd.f32 %v2347_v1, %v898_v17 }
 0xe69   :  { %v1246_v0 = vpop.f32.mrf.mxu1 }
 0xe6a   :  { %v1249_v48 = vadd.f32 %v1246_v0, %v896_v52 }
 0xe6c   :  { %1725 = vtanh.f32 %v1249_v48  ;;  %v1646_v20 = vmul.f32 -1.442695, %v1249_v48 }
 0xe6e   :  { %1727 = vpow2.f32 %v1646_v20 }
 0xe72   :  { %v1726_v40 = vpop.eup %1725 }
 0xe73   :  { %1272 = vrot.lane.b32.xlu2 %v1726_v40, %s1759_s6 }
 0xe74   :  { %v1728_v33 = vpop.eup %1727 }
 0xe75   :  { %v1253_v3 = vadd.f32 1.0, %v1728_v33 }
 0xe77   :  { %1729 = vrcp.f32 %v1253_v3  ;;  %v1265_v15 = vand.u32 2147483648, %v1253_v3  ;;  %vm1259_vm1 = vweird.f32 %v1253_v3  ;;  %v1263_v11 = vand.u32 2147483647, %v1253_v3 }
 0xe79   :  { %v1266_v14 = vor.u32 1.1754944e-38, %v1265_v15  ;;  %vm1264_vm4 = vcmp.eq.f32.partialorder %v1263_v11, 8.507059e+37 }
 0xe7b   :  { %725 = vperm.xlu2 %1679, %v702_v22  }
 0xe7d   :  { %v1730_v6 = vpop.eup %1729 }
 0xe7e   :  { %v1255_v25 = vmul.f32 %v1730_v6, %v1253_v3  ;;  %vm1260_vm15 = vweird.f32 %v1730_v6 }
 0xe7f   :  { %vm1261_vm2 = vmor %vm1259_vm1, %vm1260_vm15 }
 0xe80   :  { %v1256_v8 = vsub.f32 1.0, %v1255_v25 }
 0xe82   :  { %v1257_v18 = vmul.f32 %v1730_v6, %v1256_v8 }
 0xe84   :  { %v1258_v21 = vadd.f32 %v1730_v6, %v1257_v18 }
 0xe86   :  { %v1262_v10 = vsel %vm1261_vm2, %v1730_v6, %v1258_v21 }
 0xe87   :  { %v1267_v19 = vsel %vm1264_vm4, %v1266_v14, %v1262_v10 }
 0xe88   :  { %v1270_v30 = vmul.f32 %v1267_v19, %v1217_v35 }
 0xecd   :  { %v1273_v5 = vpop.permute.xlu2 %1272 }
 0xece   :  { %v1275_v7 = vmul.f32 %v1273_v5, %v1267_v19 }
 0xed0   :  { %1277 = vrot.lane.b32.xlu0 %v1275_v7, %s1760_s7 }
 0xed5   :  { %v726_v23 = vpop.permute.xlu2 %725 }
 0xed6   :  { %vm736_vm5 = vcmp.eq.s32.totalorder %v2366_v12, %v726_v23 }
 0xed7   :  { %v1617_v27 = vsel %vm736_vm5, 1.0, %v1757_v24 }
 0xed8   :  { %1625 = vmatmul.msk.f32.gmra.mxu3 %vm762_vm3, %v1617_v27  ;;  %728 = vperm.xlu0 %1678, %v703_v2  }
 0xf42   :  { %v1278_v4 = vpop.permute.xlu0 %1277 }
 0xf43   :  { %v2491_v36 = vadd.f32 %v1278_v4, %v1270_v30 }
 0xf45   :  { %1731 = vtanh.f32 %v2491_v36 }
 0xf4a   :  { %v729_v62 = vpop.permute.xlu0 %728 }
 0xf4b   :  { %v1732_v38 = vpop.eup %1731  ;;  %vm737_vm6 = vcmp.eq.s32.totalorder %v2366_v12, %v729_v62  ;;  %v1479_v12 = vld [vmem:[%s2598_s11 + $0x18] sm:$0xff] }
 0xf4c   :  { %v1618_v58 = vsel %vm737_vm6, 1.0, %v1757_v24  ;;  %1283 = vrot.lane.b32.xlu1 %v1732_v38, %s1759_s6  ;;  %v1478_v24 = vld [vmem:[%s2598_s11 + $0x10] sm:$0xff]  ;;  %1501 = vmatpush.msra.mxu3 %v1479_v12 }
 0xf4d   :  { %1626 = vmatmul.msk.f32.gmra.mxu3 %vm762_vm3, %v1618_v58 }
 0xf4e   :  { %1502 = vmatpush.msra.mxu3 %v1478_v24 }
 0xf50   :  { %1503 = vmatpush.msra.mxu3 %v1477_v28 }
 0xf52   :  { %1504 = vmatpush.msra.mxu3 %v1476_v57 }
 0xf5b   :  { %v822_v41 = vpop.f32.mrf.mxu3 }
 0xf5c   :  { %1634 = vmatmul.msk.f32.gmra.mxu2 %vm116_vm0, %v822_v41 }
 0xfbe   :  { %v1284_v43 = vpop.permute.xlu1 %1283 }
 0xfbf   :  { %v1286_v45 = vmul.f32 %v1284_v43, %v1267_v19 }
 0xfc1   :  { %1288 = vrot.lane.b32.xlu1 %v1286_v45, %s1760_s7 }
 0xfd0   :  { %v825_v46 = vpop.f32.mrf.mxu3 }
 0xfd1   :  { %1635 = vmatmul.msk.f32.gmra.mxu2 %vm116_vm0, %v825_v46 }
 0xfdf   :  { %v901_v10 = vpop.f32.mrf.mxu2 }
 0xfe0   :  { %v902_v14 = vadd.f32 %v2347_v1, %v901_v10 }
0x1033   :  { %v1289_v55 = vpop.permute.xlu1 %1288 }
0x1034   :  { %1647 = vmatmul.msk.f32.vlgmr.msrb.gmra.mxu3 %vm116_vm0, %v1289_v55 }
0x103c   :  { %1653 = vmatmul.msk.f32.vlgmr.msra.gmra.mxu3 %vm116_vm0, %v2388_v16  ;;  %v2529_v16 = vld [vmem:[%s2599_s12] ss:$0 sm:$0xff] }
0x1044   :  { %1654 = vmatmul.msk.f32.gmra.mxu3 %vm116_vm0, %v2408_v13 }
0x104c   :  { %1655 = vmatmul.msk.f32.gmra.mxu3 %vm116_vm0, %v2435_v53 }
0x1054   :  { %1656 = vmatmul.msk.f32.gmra.mxu3 %vm116_vm0, %v2455_v32 }
0x105c   :  { %1657 = vmatmul.msk.f32.gmra.mxu3 %vm116_vm0, %v2475_v59 }
0x1064   :  { %1658 = vmatmul.msk.f32.gmra.mxu3 %vm116_vm0, %v1289_v55 }
0x10b7   :  { %v1309_v61 = vpop.f32.mrf.mxu3 }
0x10b8   :  { %v1312_v44 = vadd.f32 %v1309_v61, %v899_v47 }
0x10ba   :  { %1733 = vtanh.f32 %v1312_v44  ;;  %v1648_v51 = vmul.f32 -1.442695, %v1312_v44 }
0x10bc   :  { %1735 = vpow2.f32 %v1648_v51 }
0x10bf   :  { %v1506_v13 = vpop.f32.mrf.mxu3 }
0x10c0   :  { %v1734_v53 = vpop.eup %1733  ;;  %v1507_v32 = vadd.f32 %v2529_v16, %v1506_v13 }
0x10c1   :  { %1335 = vrot.lane.b32.xlu2 %v1734_v53, %s1759_s6 }
0x10c2   :  { %1533 = vst [vmem:[%s2600_s13] sm:$0xff] %v1507_v32  ;;  %v1736_v31 = vpop.eup %1735  ;;  %v904_v32 = vpop.f32.mrf.mxu2 }
0x10c3   :  { %v1316_v29 = vadd.f32 1.0, %v1736_v31 }
0x10c5   :  { %1737 = vrcp.f32 %v1316_v29  ;;  %v1328_v0 = vand.u32 2147483648, %v1316_v29  ;;  %vm1322_vm7 = vweird.f32 %v1316_v29  ;;  %v1326_v48 = vand.u32 2147483647, %v1316_v29 }
0x10c7   :  { %v1509_v49 = vpop.f32.mrf.mxu3  ;;  %v1329_v22 = vor.u32 1.1754944e-38, %v1328_v0  ;;  %vm1327_vm9 = vcmp.eq.f32.partialorder %v1326_v48, 8.507059e+37 }
0x10c8   :  { %v1510_v37 = vadd.f32 %v2529_v16, %v1509_v49  ;;  %v905_v49 = vadd.f32 %v2347_v1, %v904_v32 }
0x10ca   :  { %1534 = vst [vmem:[%s2600_s13 + $0x8] sm:$0xff] %v1510_v37 }
0x10cb   :  { %v1738_v56 = vpop.eup %1737 }
0x10cc   :  { %v1318_v54 = vmul.f32 %v1738_v56, %v1316_v29  ;;  %vm1323_vm3 = vweird.f32 %v1738_v56 }
0x10cd   :  { %vm1324_vm8 = vmor %vm1322_vm7, %vm1323_vm3 }
0x10ce   :  { %v1319_v59 = vsub.f32 1.0, %v1318_v54 }
0x10cf   :  { %v1512_v39 = vpop.f32.mrf.mxu3 }
0x10d0   :  { %v1513_v26 = vadd.f32 %v2529_v16, %v1512_v39  ;;  %v1320_v63 = vmul.f32 %v1738_v56, %v1319_v59 }
0x10d2   :  { %1535 = vst [vmem:[%s2600_s13 + $0x10] sm:$0xff] %v1513_v26  ;;  %v1321_v52 = vadd.f32 %v1738_v56, %v1320_v63 }
0x10d4   :  { %v1325_v40 = vsel %vm1324_vm8, %v1738_v56, %v1321_v52 }
0x10d5   :  { %v1330_v33 = vsel %vm1327_vm9, %v1329_v22, %v1325_v40 }
0x10d6   :  { %v1333_v6 = vmul.f32 %v1330_v33, %v2491_v36 }
0x10d7   :  { %v1515_v9 = vpop.f32.mrf.mxu3 }
0x10d8   :  { %v1516_v42 = vadd.f32 %v2529_v16, %v1515_v9 }
0x10da   :  { %1536 = vst [vmem:[%s2600_s13 + $0x18] sm:$0xff] %v1516_v42 }
0x10df   :  { %v1518_v50 = vpop.f32.mrf.mxu3 }
0x10e0   :  { %v1519_v34 = vadd.f32 %v2529_v16, %v1518_v50 }
0x10e2   :  { %1537 = vst [vmem:[%s2600_s13 + $0x20] sm:$0xff] %v1519_v34 }
0x10e7   :  { %v1521_v35 = vpop.f32.mrf.mxu3 }
0x10e8   :  { %v1522_v60 = vadd.f32 %v2529_v16, %v1521_v35 }
0x10ea   :  { %1538 = vst [vmem:[%s2600_s13 + $0x28] sm:$0xff] %v1522_v60 }
0x111b   :  { %v1336_v20 = vpop.permute.xlu2 %1335 }
0x111c   :  { %v1338_v3 = vmul.f32 %v1336_v20, %v1330_v33 }
0x111e   :  { %1340 = vrot.lane.b32.xlu0 %v1338_v3, %s1760_s7 }
0x1190   :  { %v1341_v25 = vpop.permute.xlu0 %1340 }
0x1191   :  { %v1343_v8 = vadd.f32 %v1341_v25, %v1333_v6 }
0x1193   :  { %1739 = vtanh.f32 %v1343_v8 }
0x1199   :  { %v1740_v18 = vpop.eup %1739 }
0x119a   :  { %1346 = vrot.lane.b32.xlu1 %v1740_v18, %s1759_s6 }
0x120c   :  { %v1347_v21 = vpop.permute.xlu1 %1346 }
0x120d   :  { %v1349_v15 = vmul.f32 %v1347_v21, %v1330_v33 }
0x120f   :  { %1351 = vrot.lane.b32.xlu2 %v1349_v15, %s1760_s7 }
0x1269   :  { %v1352_v11 = vpop.permute.xlu2 %1351 }
0x126a   :  { %1649 = vmatmul.msk.f32.vlgmr.msrb.gmra.mxu1 %vm116_vm0, %v1352_v11  ;;  %1659 = vmatmul.msk.f32.gmra.mxu3 %vm116_vm0, %v1352_v11 }
0x12e7   :  { %v1372_v5 = vpop.f32.mrf.mxu1 }
0x12e8   :  { %v1375_v19 = vadd.f32 %v1372_v5, %v902_v14 }
0x12ea   :  { %1741 = vtanh.f32 %v1375_v19  ;;  %v1650_v27 = vmul.f32 -1.442695, %v1375_v19 }
0x12ec   :  { %1743 = vpow2.f32 %v1650_v27 }
0x12ed   :  { %v1524_v7 = vpop.f32.mrf.mxu3 }
0x12ee   :  { %v1525_v23 = vadd.f32 %v2529_v16, %v1524_v7 }
0x12f0   :  { %v1742_v2 = vpop.eup %1741  ;;  %1539 = vst [vmem:[%s2600_s13 + $0x30] sm:$0xff] %v1525_v23 }
0x12f1   :  { %1398 = vrot.lane.b32.xlu0 %v1742_v2, %s1759_s6 }
0x12f2   :  { %v1744_v30 = vpop.eup %1743 }
0x12f3   :  { %v1379_v4 = vadd.f32 1.0, %v1744_v30 }
0x12f5   :  { %1745 = vrcp.f32 %v1379_v4  ;;  %v1391_v43 = vand.u32 2147483648, %v1379_v4  ;;  %vm1385_vm11 = vweird.f32 %v1379_v4  ;;  %v1389_v45 = vand.u32 2147483647, %v1379_v4 }
0x12f7   :  { %v1392_v12 = vor.u32 1.1754944e-38, %v1391_v43  ;;  %vm1390_vm13 = vcmp.eq.f32.partialorder %v1389_v45, 8.507059e+37 }
0x12fb   :  { %v1746_v36 = vpop.eup %1745 }
0x12fc   :  { %v1381_v62 = vmul.f32 %v1746_v36, %v1379_v4  ;;  %vm1386_vm10 = vweird.f32 %v1746_v36 }
0x12fd   :  { %vm1387_vm12 = vmor %vm1385_vm11, %vm1386_vm10 }
0x12fe   :  { %v1382_v38 = vsub.f32 1.0, %v1381_v62 }
0x1300   :  { %v1383_v58 = vmul.f32 %v1746_v36, %v1382_v38 }
0x1302   :  { %v1384_v41 = vadd.f32 %v1746_v36, %v1383_v58 }
0x1304   :  { %v1388_v46 = vsel %vm1387_vm12, %v1746_v36, %v1384_v41 }
0x1305   :  { %v1393_v28 = vsel %vm1390_vm13, %v1392_v12, %v1388_v46 }
0x1306   :  { %v1396_v55 = vmul.f32 %v1393_v28, %v1343_v8 }
0x1363   :  { %v1399_v24 = vpop.permute.xlu0 %1398 }
0x1364   :  { %v1401_v57 = vmul.f32 %v1399_v24, %v1393_v28 }
0x1366   :  { %1403 = vrot.lane.b32.xlu1 %v1401_v57, %s1760_s7 }
0x13d8   :  { %v1404_v17 = vpop.permute.xlu1 %1403 }
0x13d9   :  { %v1406_v47 = vadd.f32 %v1404_v17, %v1396_v55 }
0x13db   :  { %1747 = vtanh.f32 %v1406_v47 }
0x13e1   :  { %v1748_v61 = vpop.eup %1747 }
0x13e2   :  { %1409 = vrot.lane.b32.xlu2 %v1748_v61, %s1759_s6 }
0x143c   :  { %v1410_v44 = vpop.permute.xlu2 %1409 }
0x143d   :  { %v1412_v13 = vmul.f32 %v1410_v44, %v1393_v28 }
0x143f   :  { %1414 = vrot.lane.b32.xlu0 %v1412_v13, %s1760_s7 }
0x14b1   :  { %v1415_v53 = vpop.permute.xlu0 %1414 }
0x14b2   :  { %1651 = vmatmul.msk.f32.vlgmr.msra.gmra.mxu2 %vm116_vm0, %v1415_v53  ;;  %1660 = vmatmul.msk.f32.gmra.mxu3 %vm116_vm0, %v1415_v53 }
0x1535   :  { %v1435_v37 = vpop.f32.mrf.mxu2  ;;  %v1527_v39 = vpop.f32.mrf.mxu3 }
0x1536   :  { %v1438_v26 = vadd.f32 %v1435_v37, %v905_v49  ;;  %v1528_v9 = vadd.f32 %v2529_v16, %v1527_v39 }
0x1538   :  { %1749 = vtanh.f32 %v1438_v26  ;;  %1540 = vst [vmem:[%s2600_s13 + $0x38] sm:$0xff] %v1528_v9  ;;  %v1652_v50 = vmul.f32 -1.442695, %v1438_v26 }
0x153a   :  { %1751 = vpow2.f32 %v1652_v50 }
0x153e   :  { %v1750_v42 = vpop.eup %1749 }
0x153f   :  { %1461 = vrot.lane.b32.xlu1 %v1750_v42, %s1759_s6 }
0x1540   :  { %v1752_v34 = vpop.eup %1751 }
0x1541   :  { %v1442_v35 = vadd.f32 1.0, %v1752_v34 }
0x1543   :  { %1753 = vrcp.f32 %v1442_v35  ;;  %v1454_v56 = vand.u32 2147483648, %v1442_v35  ;;  %vm1448_vm15 = vweird.f32 %v1442_v35  ;;  %v1452_v54 = vand.u32 2147483647, %v1442_v35 }
0x1545   :  { %v1455_v63 = vor.u32 1.1754944e-38, %v1454_v56  ;;  %vm1453_vm2 = vcmp.eq.f32.partialorder %v1452_v54, 8.507059e+37 }
0x1549   :  { %v1754_v60 = vpop.eup %1753 }
0x154a   :  { %v1444_v1 = vmul.f32 %v1754_v60, %v1442_v35  ;;  %vm1449_vm14 = vweird.f32 %v1754_v60 }
0x154b   :  { %vm1450_vm1 = vmor %vm1448_vm15, %vm1449_vm14 }
0x154c   :  { %v1445_v51 = vsub.f32 1.0, %v1444_v1 }
0x154e   :  { %v1446_v31 = vmul.f32 %v1754_v60, %v1445_v51 }
0x1550   :  { %v1447_v29 = vadd.f32 %v1754_v60, %v1446_v31 }
0x1552   :  { %v1451_v59 = vsel %vm1450_vm1, %v1754_v60, %v1447_v29 }
0x1553   :  { %v1456_v0 = vsel %vm1453_vm2, %v1455_v63, %v1451_v59 }
0x1554   :  { %v1459_v40 = vmul.f32 %v1456_v0, %v1406_v47 }
0x15b1   :  { %v1462_v52 = vpop.permute.xlu1 %1461 }
0x15b2   :  { %v1464_v48 = vmul.f32 %v1462_v52, %v1456_v0 }
0x15b4   :  { %1466 = vrot.lane.b32.xlu2 %v1464_v48, %s1760_s7 }
0x160e   :  { %v1467_v22 = vpop.permute.xlu2 %1466 }
0x160f   :  { %v1469_v20 = vadd.f32 %v1467_v22, %v1459_v40 }
0x1611   :  { %1755 = vtanh.f32 %v1469_v20 }
0x1617   :  { %v1756_v33 = vpop.eup %1755 }
0x1618   :  { %1472 = vrot.lane.b32.xlu0 %v1756_v33, %s1759_s6 }
0x168a   :  { %v1473_v3 = vpop.permute.xlu0 %1472 }
0x168b   :  { %v1475_v6 = vmul.f32 %v1473_v3, %v1456_v0 }
0x168d   :  { %1485 = vrot.lane.b32.xlu1 %v1475_v6, %s1760_s7 }
0x16ff   :  { %v1486_v25 = vpop.permute.xlu1 %1485 }
0x1700   :  { %1661 = vmatmul.msk.f32.gmra.mxu3 %vm116_vm0, %v1486_v25 }
0x1783   :  { %v1530_v8 = vpop.f32.mrf.mxu3 }
0x1784   :  { %v1531_v18 = vadd.f32 %v2529_v16, %v1530_v8 }
0x1786   :  { %1541 = vst [vmem:[%s2600_s13 + $0x40] sm:$0xff] %v1531_v18 }

</bundles_post_ra>
